<compile_context>
chip_gen: v5e
topology: v5e:2x2
jax: 0.10.0
libtpu: 0.0.40
codegen_flags: <defaults>
</compile_context>

<pallas_src>
import functools

import jax
import jax.numpy as jnp
from jax import lax
from jax.experimental import pallas as pl
from jax.experimental.pallas import tpu as pltpu


def _spatial_attention_kernel(w_ref, rc_ref, x_ref, o_ref, sum_ref, max_ref,
                              *, C, H, W, K):
    """Grid = (batch blocks, channel blocks); channel axis is the reduction.

    w_ref  : SMEM (2*K*K,) f32   flattened conv1 weight (out=1, in=2, K, K)
    rc_ref : VMEM (2, H*W) i32   row ids / col ids of each flattened pixel
    x_ref  : VMEM (Bn, Ct, H*W)  input block (spatial dims flattened)
    o_ref  : VMEM (Bn, H*W)      output attention map (flattened)
    sum_ref, max_ref : VMEM (Bn, H*W) f32 running channel sum / channel max
    """
    p = (K - 1) // 2
    HW = H * W
    Bn, Ct, _ = x_ref.shape
    c_blk = pl.program_id(1)

    # ---- fused single-pass channel sum & max (per-channel cast to f32) ----
    x0 = x_ref[:, 0, :].astype(jnp.float32)
    blk_sum = x0
    blk_max = x0
    for c in range(1, Ct):                      # Ct is a compile-time constant
        xc = x_ref[:, c, :].astype(jnp.float32)
        blk_sum = blk_sum + xc
        blk_max = jnp.maximum(blk_max, xc)

    @pl.when(c_blk == 0)
    def _init():
        sum_ref[...] = blk_sum
        max_ref[...] = blk_max

    @pl.when(c_blk > 0)
    def _accumulate():
        sum_ref[...] = sum_ref[...] + blk_sum
        max_ref[...] = jnp.maximum(max_ref[...], blk_max)

    # ---- finalize: 7x7 "same" conv over [mean; max] via rolls + masks ----
    @pl.when(c_blk == pl.num_programs(1) - 1)
    def _finalize():
        avg = sum_ref[...] * (1.0 / C)          # (Bn, HW) f32
        mx = max_ref[...]                       # (Bn, HW) f32

        # Row/col ids of each flattened pixel (precomputed on host, broadcast
        # once — avoids any in-kernel integer div/mod).
        row_ids = jnp.broadcast_to(rc_ref[0:1, :], (Bn, HW))
        col_ids = jnp.broadcast_to(rc_ref[1:2, :], (Bn, HW))

        def _ok(ids, d, n):
            if d == 0:
                return None                     # whole extent valid
            if d > 0:
                return ids < (n - d)
            return ids >= (-d)

        row_ok = {kh: _ok(row_ids, kh - p, H) for kh in range(K)}
        col_ok = {kw: _ok(col_ids, kw - p, W) for kw in range(K)}

        # 4 partial accumulators expose ILP (no f32 FMA on v5e/v6e VALUs).
        accs = [jnp.zeros((Bn, HW), jnp.float32) for _ in range(4)]
        t = 0
        for kh in range(K):
            dh = kh - p
            for kw in range(K):
                dw = kw - p
                wa = w_ref[kh * K + kw]              # weight for the avg plane
                wb = w_ref[K * K + kh * K + kw]      # weight for the max plane
                # Combine the two planes before shifting: one roll per tap.
                comb = wa * avg + wb * mx
                shift = dh * W + dw                  # shift in flattened layout
                if shift == 0:
                    rolled = comb
                else:
                    rolled = pltpu.roll(comb, (-shift) % HW, 1)
                rm, cm = row_ok[kh], col_ok[kw]
                if rm is None and cm is None:
                    tap = rolled
                else:
                    mask = rm if cm is None else (cm if rm is None else rm & cm)
                    tap = jnp.where(mask, rolled, 0.0)
                accs[t % 4] = accs[t % 4] + tap
                t += 1

        out = (accs[0] + accs[1]) + (accs[2] + accs[3])
        o_ref[...] = jax.nn.sigmoid(out).astype(o_ref.dtype)


def _pick_blocks(n, c, hw, itemsize, budget=4 * 1024 * 1024):
    """Pick (Bn, Ct) so the x block fits a VMEM budget while respecting the
    TPU block constraint (2nd-to-last block dim multiple of 8 or full)."""
    row_bytes = hw * itemsize
    # Channel block: whole C if it fits, else the largest multiple-of-8
    # divisor of C that fits; fall back to full C if none exists.
    if c * row_bytes <= budget or c <= 8:
        ct = c
    else:
        ct = c
        cap = max(8, (budget // row_bytes) // 8 * 8)
        for cand in range(min(cap, (c // 8) * 8), 7, -8):
            if c % cand == 0:
                ct = cand
                break
    # Batch block: whole N if it fits, else a multiple of 8 (ragged tail is
    # handled by the cdiv grid; out-of-range rows are independent and cropped).
    if n * ct * row_bytes <= budget:
        bn = n
    else:
        bn = max(8, (budget // (ct * row_bytes)) // 8 * 8)
        if bn >= n:
            bn = n
    return bn, ct


def spatial_attention(x, conv_weight, kernel_size=7):
    """x: (N, C, H, W); conv_weight: (1, 2, K, K).  Returns (N, 1, H, W)."""
    assert kernel_size in (3, 7)
    N, C, H, W = x.shape
    K = kernel_size
    HW = H * W

    w_flat = conv_weight.reshape(-1).astype(jnp.float32)   # (2*K*K,)
    x_flat = x.reshape(N, C, HW)                            # lane-dense layout
    ar = jnp.arange(HW, dtype=jnp.int32)
    rc_ids = jnp.stack([ar // W, ar % W], axis=0)           # (2, HW) int32

    Bn, Ct = _pick_blocks(N, C, HW, x.dtype.itemsize)
    grid = (pl.cdiv(N, Bn), C // Ct)

    kernel = functools.partial(_spatial_attention_kernel, C=C, H=H, W=W, K=K)

    out_flat = pl.pallas_call(
        kernel,
        out_shape=jax.ShapeDtypeStruct((N, HW), x.dtype),
        grid_spec=pltpu.PrefetchScalarGridSpec(
            num_scalar_prefetch=0,
            grid=grid,
            in_specs=[
                # conv weights, whole array, scalar memory
                pl.BlockSpec(memory_space=pltpu.MemorySpace.SMEM),
                # row/col ids, same block every step (fetched once)
                pl.BlockSpec((2, HW), lambda n, c: (0, 0)),
                # input block: Bn samples x Ct channels x full spatial plane
                pl.BlockSpec((Bn, Ct, HW), lambda n, c: (n, c, 0)),
            ],
            out_specs=pl.BlockSpec((Bn, HW), lambda n, c: (n, 0)),
            scratch_shapes=[
                pltpu.VMEM((Bn, HW), jnp.float32),   # running channel sum
                pltpu.VMEM((Bn, HW), jnp.float32),   # running channel max
            ],
        ),
        compiler_params=pltpu.CompilerParams(
            dimension_semantics=("parallel", "arbitrary"),
        ),
    )(w_flat, rc_ids, x_flat)

    return out_flat.reshape(N, 1, H, W)


def _reference(x, conv_weight):
    """Pure-JAX reference matching the PyTorch forward (NCHW)."""
    avg_out = jnp.mean(x, axis=1, keepdims=True)
    max_out = jnp.max(x, axis=1, keepdims=True)
    cat = jnp.concatenate([avg_out, max_out], axis=1)
    pad = (conv_weight.shape[-1] - 1) // 2
    y = lax.conv_general_dilated(
        cat, conv_weight,
        window_strides=(1, 1),
        padding=[(pad, pad), (pad, pad)],
        dimension_numbers=("NCHW", "OIHW", "NCHW"),
    )
    return jax.nn.sigmoid(y)


if __name__ == "__main__":
    key = jax.random.PRNGKey(0)
    kx, kw = jax.random.split(key)

    N, C, H, W = 2, 4, 16, 16
    kernel_size = 7

    x = jax.random.normal(kx, (N, C, H, W), dtype=jnp.float32)
    # Deterministic synthetic weights for conv1: (out=1, in=2, K, K), no bias.
    conv_weight = (
        jax.random.normal(kw, (1, 2, kernel_size, kernel_size), dtype=jnp.float32)
        * 0.1
    )

    out = spatial_attention(x, conv_weight, kernel_size=kernel_size)
    out = jax.block_until_ready(out)

    ref = _reference(x, conv_weight)
    assert out.shape == (N, 1, H, W)
    err = float(jnp.max(jnp.abs(out - ref)))
    assert err < 1e-5, err

    print("KERNEL_OK")
</pallas_src>

<mosaic_0001>
module attributes {stable_mosaic.version = 11 : i64} {
  func.func @_spatial_attention_kernel(%arg0: i32, %arg1: i32, %arg2: memref<98xf32, #tpu.memory_space<smem>>, %arg3: memref<2x256xi32, #tpu.memory_space<vmem>>, %arg4: memref<2x4x256xf32, #tpu.memory_space<vmem>>, %arg5: memref<2x256xf32, #tpu.memory_space<vmem>>, %arg6: memref<2x256xf32, #tpu.memory_space<vmem>>, %arg7: memref<2x256xf32, #tpu.memory_space<vmem>>) attributes {dimension_semantics = [#tpu.dimension_semantics<parallel>, #tpu.dimension_semantics<arbitrary>], iteration_bounds = array<i64: 1, 1>, scalar_prefetch = 0 : i64, scratch_operands = 2 : i64, tpu.core_type = #tpu.core_type<tc>, window_params = [{transform_indices = @transform_0, window_bounds = array<i64: 98>}, {pipeline_mode = #tpu.pipeline_mode<synchronous>, transform_indices = @transform_1, window_bounds = array<i64: 2, 256>}, {transform_indices = @transform_2, window_bounds = array<i64: 2, 4, 256>}, {transform_indices = @transform_3, window_bounds = array<i64: 2, 256>}]} {
    %c0 = arith.constant 0 : index
    %c0_0 = arith.constant 0 : index
    %c0_1 = arith.constant 0 : index
    %0 = vector.load %arg4[%c0, %c0_0, %c0_1] : memref<2x4x256xf32, #tpu.memory_space<vmem>>, vector<2x1x256xf32>
    %1 = vector.shape_cast %0 : vector<2x1x256xf32> to vector<2x256xf32>
    %c0_2 = arith.constant 0 : index
    %c1 = arith.constant 1 : index
    %c0_3 = arith.constant 0 : index
    %2 = vector.load %arg4[%c0_2, %c1, %c0_3] : memref<2x4x256xf32, #tpu.memory_space<vmem>>, vector<2x1x256xf32>
    %3 = vector.shape_cast %2 : vector<2x1x256xf32> to vector<2x256xf32>
    %4 = arith.addf %1, %3 : vector<2x256xf32>
    %5 = arith.maximumf %1, %3 : vector<2x256xf32>
    %c0_4 = arith.constant 0 : index
    %c2 = arith.constant 2 : index
    %c0_5 = arith.constant 0 : index
    %6 = vector.load %arg4[%c0_4, %c2, %c0_5] : memref<2x4x256xf32, #tpu.memory_space<vmem>>, vector<2x1x256xf32>
    %7 = vector.shape_cast %6 : vector<2x1x256xf32> to vector<2x256xf32>
    %8 = arith.addf %4, %7 : vector<2x256xf32>
    %9 = arith.maximumf %5, %7 : vector<2x256xf32>
    %c0_6 = arith.constant 0 : index
    %c3 = arith.constant 3 : index
    %c0_7 = arith.constant 0 : index
    %10 = vector.load %arg4[%c0_6, %c3, %c0_7] : memref<2x4x256xf32, #tpu.memory_space<vmem>>, vector<2x1x256xf32>
    %11 = vector.shape_cast %10 : vector<2x1x256xf32> to vector<2x256xf32>
    %12 = arith.addf %8, %11 : vector<2x256xf32>
    %13 = arith.maximumf %9, %11 : vector<2x256xf32>
    %c0_i32 = arith.constant 0 : i32
    %14 = arith.cmpi eq, %arg1, %c0_i32 : i32
    %15 = arith.extui %14 : i1 to i32
    %c0_i32_8 = arith.constant 0 : i32
    %16 = arith.cmpi ne, %15, %c0_i32_8 : i32
    scf.if %16 {
      %c0_13 = arith.constant 0 : index
      %c0_14 = arith.constant 0 : index
      %23 = vector.load %arg6[%c0_13, %c0_14] : memref<2x256xf32, #tpu.memory_space<vmem>>, vector<2x256xf32>
      tpu.vector_store %arg6[%c0_13, %c0_14], %12 {strides = array<i32>} : memref<2x256xf32, #tpu.memory_space<vmem>>, vector<2x256xf32>,
      %c0_15 = arith.constant 0 : index
      %c0_16 = arith.constant 0 : index
      %24 = vector.load %arg7[%c0_15, %c0_16] : memref<2x256xf32, #tpu.memory_space<vmem>>, vector<2x256xf32>
      tpu.vector_store %arg7[%c0_15, %c0_16], %13 {strides = array<i32>} : memref<2x256xf32, #tpu.memory_space<vmem>>, vector<2x256xf32>,
    } else {
    }
    %c0_i32_9 = arith.constant 0 : i32
    %17 = arith.cmpi sgt, %arg1, %c0_i32_9 : i32
    %18 = arith.extui %17 : i1 to i32
    %c0_i32_10 = arith.constant 0 : i32
    %19 = arith.cmpi ne, %18, %c0_i32_10 : i32
    scf.if %19 {
      %c0_13 = arith.constant 0 : index
      %c0_14 = arith.constant 0 : index
      %23 = vector.load %arg6[%c0_13, %c0_14] : memref<2x256xf32, #tpu.memory_space<vmem>>, vector<2x256xf32>
      %24 = arith.addf %23, %12 : vector<2x256xf32>
      %c0_15 = arith.constant 0 : index
      %c0_16 = arith.constant 0 : index
      %25 = vector.load %arg6[%c0_15, %c0_16] : memref<2x256xf32, #tpu.memory_space<vmem>>, vector<2x256xf32>
      tpu.vector_store %arg6[%c0_15, %c0_16], %24 {strides = array<i32>} : memref<2x256xf32, #tpu.memory_space<vmem>>, vector<2x256xf32>,
      %c0_17 = arith.constant 0 : index
      %c0_18 = arith.constant 0 : index
      %26 = vector.load %arg7[%c0_17, %c0_18] : memref<2x256xf32, #tpu.memory_space<vmem>>, vector<2x256xf32>
      %27 = arith.maximumf %26, %13 : vector<2x256xf32>
      %c0_19 = arith.constant 0 : index
      %c0_20 = arith.constant 0 : index
      %28 = vector.load %arg7[%c0_19, %c0_20] : memref<2x256xf32, #tpu.memory_space<vmem>>, vector<2x256xf32>
      tpu.vector_store %arg7[%c0_19, %c0_20], %27 {strides = array<i32>} : memref<2x256xf32, #tpu.memory_space<vmem>>, vector<2x256xf32>,
    } else {
    }
    %c0_i32_11 = arith.constant 0 : i32
    %20 = arith.cmpi eq, %arg1, %c0_i32_11 : i32
    %21 = arith.extui %20 : i1 to i32
    %c0_i32_12 = arith.constant 0 : i32
    %22 = arith.cmpi ne, %21, %c0_i32_12 : i32
    scf.if %22 {
      %c0_13 = arith.constant 0 : index
      %c0_14 = arith.constant 0 : index
      %23 = vector.load %arg6[%c0_13, %c0_14] : memref<2x256xf32, #tpu.memory_space<vmem>>, vector<2x256xf32>
      %cst = arith.constant 2.500000e-01 : f32
      %24 = vector.broadcast %cst : f32 to vector<2x256xf32>
      %25 = arith.mulf %23, %24 : vector<2x256xf32>
      %c0_15 = arith.constant 0 : index
      %c0_16 = arith.constant 0 : index
      %26 = vector.load %arg7[%c0_15, %c0_16] : memref<2x256xf32, #tpu.memory_space<vmem>>, vector<2x256xf32>
      %c0_17 = arith.constant 0 : index
      %c0_18 = arith.constant 0 : index
      %27 = vector.load %arg3[%c0_17, %c0_18] : memref<2x256xi32, #tpu.memory_space<vmem>>, vector<1x256xi32>
      %28 = vector.shape_cast %27 : vector<1x256xi32> to vector<1x256xi32>
      %29 = vector.broadcast %28 : vector<1x256xi32> to vector<2x256xi32>
      %c1_19 = arith.constant 1 : index
      %c0_20 = arith.constant 0 : index
      %30 = vector.load %arg3[%c1_19, %c0_20] : memref<2x256xi32, #tpu.memory_space<vmem>>, vector<1x256xi32>
      %31 = vector.shape_cast %30 : vector<1x256xi32> to vector<1x256xi32>
      %32 = vector.broadcast %31 : vector<1x256xi32> to vector<2x256xi32>
      %c3_i32 = arith.constant 3 : i32
      %33 = vector.broadcast %c3_i32 : i32 to vector<2x256xi32>
      %34 = arith.cmpi sge, %29, %33 : vector<2x256xi32>
      %c2_i32 = arith.constant 2 : i32
      %35 = vector.broadcast %c2_i32 : i32 to vector<2x256xi32>
      %36 = arith.cmpi sge, %29, %35 : vector<2x256xi32>
      %c1_i32 = arith.constant 1 : i32
      %37 = vector.broadcast %c1_i32 : i32 to vector<2x256xi32>
      %38 = arith.cmpi sge, %29, %37 : vector<2x256xi32>
      %c15_i32 = arith.constant 15 : i32
      %39 = vector.broadcast %c15_i32 : i32 to vector<2x256xi32>
      %40 = arith.cmpi slt, %29, %39 : vector<2x256xi32>
      %c14_i32 = arith.constant 14 : i32
      %41 = vector.broadcast %c14_i32 : i32 to vector<2x256xi32>
      %42 = arith.cmpi slt, %29, %41 : vector<2x256xi32>
      %c13_i32 = arith.constant 13 : i32
      %43 = vector.broadcast %c13_i32 : i32 to vector<2x256xi32>
      %44 = arith.cmpi slt, %29, %43 : vector<2x256xi32>
      %c3_i32_21 = arith.constant 3 : i32
      %45 = vector.broadcast %c3_i32_21 : i32 to vector<2x256xi32>
      %46 = arith.cmpi sge, %32, %45 : vector<2x256xi32>
      %c2_i32_22 = arith.constant 2 : i32
      %47 = vector.broadcast %c2_i32_22 : i32 to vector<2x256xi32>
      %48 = arith.cmpi sge, %32, %47 : vector<2x256xi32>
      %c1_i32_23 = arith.constant 1 : i32
      %49 = vector.broadcast %c1_i32_23 : i32 to vector<2x256xi32>
      %50 = arith.cmpi sge, %32, %49 : vector<2x256xi32>
      %c15_i32_24 = arith.constant 15 : i32
      %51 = vector.broadcast %c15_i32_24 : i32 to vector<2x256xi32>
      %52 = arith.cmpi slt, %32, %51 : vector<2x256xi32>
      %c14_i32_25 = arith.constant 14 : i32
      %53 = vector.broadcast %c14_i32_25 : i32 to vector<2x256xi32>
      %54 = arith.cmpi slt, %32, %53 : vector<2x256xi32>
      %c13_i32_26 = arith.constant 13 : i32
      %55 = vector.broadcast %c13_i32_26 : i32 to vector<2x256xi32>
      %56 = arith.cmpi slt, %32, %55 : vector<2x256xi32>
      %cst_27 = arith.constant 0.000000e+00 : f32
      %57 = vector.broadcast %cst_27 : f32 to vector<2x256xf32>
      %cst_28 = arith.constant 0.000000e+00 : f32
      %58 = vector.broadcast %cst_28 : f32 to vector<2x256xf32>
      %cst_29 = arith.constant 0.000000e+00 : f32
      %59 = vector.broadcast %cst_29 : f32 to vector<2x256xf32>
      %cst_30 = arith.constant 0.000000e+00 : f32
      %60 = vector.broadcast %cst_30 : f32 to vector<2x256xf32>
      %c0_31 = arith.constant 0 : index
      %61 = memref.load %arg2[%c0_31] : memref<98xf32, #tpu.memory_space<smem>>
      %c49 = arith.constant 49 : index
      %62 = memref.load %arg2[%c49] : memref<98xf32, #tpu.memory_space<smem>>
      %63 = vector.broadcast %61 : f32 to vector<2x256xf32>
      %64 = arith.mulf %63, %25 : vector<2x256xf32>
      %65 = vector.broadcast %62 : f32 to vector<2x256xf32>
      %66 = arith.mulf %65, %26 : vector<2x256xf32>
      %67 = arith.addf %64, %66 : vector<2x256xf32>
      %c51_i32 = arith.constant 51 : i32
      %68 = tpu.dynamic_rotate %67 by %c51_i32 dim 1 : vector<2x256xf32>, i32 -> vector<2x256xf32>
      %69 = arith.andi %34, %46 : vector<2x256xi1>
      %cst_32 = arith.constant 0.000000e+00 : f32
      %70 = vector.broadcast %cst_32 : f32 to vector<2x256xf32>
      %71 = arith.select %69, %68, %70 : vector<2x256xi1>, vector<2x256xf32>
      %72 = arith.addf %57, %71 : vector<2x256xf32>
      %c1_33 = arith.constant 1 : index
      %73 = memref.load %arg2[%c1_33] : memref<98xf32, #tpu.memory_space<smem>>
      %c50 = arith.constant 50 : index
      %74 = memref.load %arg2[%c50] : memref<98xf32, #tpu.memory_space<smem>>
      %75 = vector.broadcast %73 : f32 to vector<2x256xf32>
      %76 = arith.mulf %75, %25 : vector<2x256xf32>
      %77 = vector.broadcast %74 : f32 to vector<2x256xf32>
      %78 = arith.mulf %77, %26 : vector<2x256xf32>
      %79 = arith.addf %76, %78 : vector<2x256xf32>
      %c50_i32 = arith.constant 50 : i32
      %80 = tpu.dynamic_rotate %79 by %c50_i32 dim 1 : vector<2x256xf32>, i32 -> vector<2x256xf32>
      %81 = arith.andi %34, %48 : vector<2x256xi1>
      %cst_34 = arith.constant 0.000000e+00 : f32
      %82 = vector.broadcast %cst_34 : f32 to vector<2x256xf32>
      %83 = arith.select %81, %80, %82 : vector<2x256xi1>, vector<2x256xf32>
      %84 = arith.addf %58, %83 : vector<2x256xf32>
      %c2_35 = arith.constant 2 : index
      %85 = memref.load %arg2[%c2_35] : memref<98xf32, #tpu.memory_space<smem>>
      %c51 = arith.constant 51 : index
      %86 = memref.load %arg2[%c51] : memref<98xf32, #tpu.memory_space<smem>>
      %87 = vector.broadcast %85 : f32 to vector<2x256xf32>
      %88 = arith.mulf %87, %25 : vector<2x256xf32>
      %89 = vector.broadcast %86 : f32 to vector<2x256xf32>
      %90 = arith.mulf %89, %26 : vector<2x256xf32>
      %91 = arith.addf %88, %90 : vector<2x256xf32>
      %c49_i32 = arith.constant 49 : i32
      %92 = tpu.dynamic_rotate %91 by %c49_i32 dim 1 : vector<2x256xf32>, i32 -> vector<2x256xf32>
      %93 = arith.andi %34, %50 : vector<2x256xi1>
      %cst_36 = arith.constant 0.000000e+00 : f32
      %94 = vector.broadcast %cst_36 : f32 to vector<2x256xf32>
      %95 = arith.select %93, %92, %94 : vector<2x256xi1>, vector<2x256xf32>
      %96 = arith.addf %59, %95 : vector<2x256xf32>
      %c3_37 = arith.constant 3 : index
      %97 = memref.load %arg2[%c3_37] : memref<98xf32, #tpu.memory_space<smem>>
      %c52 = arith.constant 52 : index
      %98 = memref.load %arg2[%c52] : memref<98xf32, #tpu.memory_space<smem>>
      %99 = vector.broadcast %97 : f32 to vector<2x256xf32>
      %100 = arith.mulf %99, %25 : vector<2x256xf32>
      %101 = vector.broadcast %98 : f32 to vector<2x256xf32>
      %102 = arith.mulf %101, %26 : vector<2x256xf32>
      %103 = arith.addf %100, %102 : vector<2x256xf32>
      %c48_i32 = arith.constant 48 : i32
      %104 = tpu.dynamic_rotate %103 by %c48_i32 dim 1 : vector<2x256xf32>, i32 -> vector<2x256xf32>
      %cst_38 = arith.constant 0.000000e+00 : f32
      %105 = vector.broadcast %cst_38 : f32 to vector<2x256xf32>
      %106 = arith.select %34, %104, %105 : vector<2x256xi1>, vector<2x256xf32>
      %107 = arith.addf %60, %106 : vector<2x256xf32>
      %c4 = arith.constant 4 : index
      %108 = memref.load %arg2[%c4] : memref<98xf32, #tpu.memory_space<smem>>
      %c53 = arith.constant 53 : index
      %109 = memref.load %arg2[%c53] : memref<98xf32, #tpu.memory_space<smem>>
      %110 = vector.broadcast %108 : f32 to vector<2x256xf32>
      %111 = arith.mulf %110, %25 : vector<2x256xf32>
      %112 = vector.broadcast %109 : f32 to vector<2x256xf32>
      %113 = arith.mulf %112, %26 : vector<2x256xf32>
      %114 = arith.addf %111, %113 : vector<2x256xf32>
      %c47_i32 = arith.constant 47 : i32
      %115 = tpu.dynamic_rotate %114 by %c47_i32 dim 1 : vector<2x256xf32>, i32 -> vector<2x256xf32>
      %116 = arith.andi %34, %52 : vector<2x256xi1>
      %cst_39 = arith.constant 0.000000e+00 : f32
      %117 = vector.broadcast %cst_39 : f32 to vector<2x256xf32>
      %118 = arith.select %116, %115, %117 : vector<2x256xi1>, vector<2x256xf32>
      %119 = arith.addf %72, %118 : vector<2x256xf32>
      %c5 = arith.constant 5 : index
      %120 = memref.load %arg2[%c5] : memref<98xf32, #tpu.memory_space<smem>>
      %c54 = arith.constant 54 : index
      %121 = memref.load %arg2[%c54] : memref<98xf32, #tpu.memory_space<smem>>
      %122 = vector.broadcast %120 : f32 to vector<2x256xf32>
      %123 = arith.mulf %122, %25 : vector<2x256xf32>
      %124 = vector.broadcast %121 : f32 to vector<2x256xf32>
      %125 = arith.mulf %124, %26 : vector<2x256xf32>
      %126 = arith.addf %123, %125 : vector<2x256xf32>
      %c46_i32 = arith.constant 46 : i32
      %127 = tpu.dynamic_rotate %126 by %c46_i32 dim 1 : vector<2x256xf32>, i32 -> vector<2x256xf32>
      %128 = arith.andi %34, %54 : vector<2x256xi1>
      %cst_40 = arith.constant 0.000000e+00 : f32
      %129 = vector.broadcast %cst_40 : f32 to vector<2x256xf32>
      %130 = arith.select %128, %127, %129 : vector<2x256xi1>, vector<2x256xf32>
      %131 = arith.addf %84, %130 : vector<2x256xf32>
      %c6 = arith.constant 6 : index
      %132 = memref.load %arg2[%c6] : memref<98xf32, #tpu.memory_space<smem>>
      %c55 = arith.constant 55 : index
      %133 = memref.load %arg2[%c55] : memref<98xf32, #tpu.memory_space<smem>>
      %134 = vector.broadcast %132 : f32 to vector<2x256xf32>
      %135 = arith.mulf %134, %25 : vector<2x256xf32>
      %136 = vector.broadcast %133 : f32 to vector<2x256xf32>
      %137 = arith.mulf %136, %26 : vector<2x256xf32>
      %138 = arith.addf %135, %137 : vector<2x256xf32>
      %c45_i32 = arith.constant 45 : i32
      %139 = tpu.dynamic_rotate %138 by %c45_i32 dim 1 : vector<2x256xf32>, i32 -> vector<2x256xf32>
      %140 = arith.andi %34, %56 : vector<2x256xi1>
      %cst_41 = arith.constant 0.000000e+00 : f32
      %141 = vector.broadcast %cst_41 : f32 to vector<2x256xf32>
      %142 = arith.select %140, %139, %141 : vector<2x256xi1>, vector<2x256xf32>
      %143 = arith.addf %96, %142 : vector<2x256xf32>
      %c7 = arith.constant 7 : index
      %144 = memref.load %arg2[%c7] : memref<98xf32, #tpu.memory_space<smem>>
      %c56 = arith.constant 56 : index
      %145 = memref.load %arg2[%c56] : memref<98xf32, #tpu.memory_space<smem>>
      %146 = vector.broadcast %144 : f32 to vector<2x256xf32>
      %147 = arith.mulf %146, %25 : vector<2x256xf32>
      %148 = vector.broadcast %145 : f32 to vector<2x256xf32>
      %149 = arith.mulf %148, %26 : vector<2x256xf32>
      %150 = arith.addf %147, %149 : vector<2x256xf32>
      %c35_i32 = arith.constant 35 : i32
      %151 = tpu.dynamic_rotate %150 by %c35_i32 dim 1 : vector<2x256xf32>, i32 -> vector<2x256xf32>
      %152 = arith.andi %36, %46 : vector<2x256xi1>
      %cst_42 = arith.constant 0.000000e+00 : f32
      %153 = vector.broadcast %cst_42 : f32 to vector<2x256xf32>
      %154 = arith.select %152, %151, %153 : vector<2x256xi1>, vector<2x256xf32>
      %155 = arith.addf %107, %154 : vector<2x256xf32>
      %c8 = arith.constant 8 : index
      %156 = memref.load %arg2[%c8] : memref<98xf32, #tpu.memory_space<smem>>
      %c57 = arith.constant 57 : index
      %157 = memref.load %arg2[%c57] : memref<98xf32, #tpu.memory_space<smem>>
      %158 = vector.broadcast %156 : f32 to vector<2x256xf32>
      %159 = arith.mulf %158, %25 : vector<2x256xf32>
      %160 = vector.broadcast %157 : f32 to vector<2x256xf32>
      %161 = arith.mulf %160, %26 : vector<2x256xf32>
      %162 = arith.addf %159, %161 : vector<2x256xf32>
      %c34_i32 = arith.constant 34 : i32
      %163 = tpu.dynamic_rotate %162 by %c34_i32 dim 1 : vector<2x256xf32>, i32 -> vector<2x256xf32>
      %164 = arith.andi %36, %48 : vector<2x256xi1>
      %cst_43 = arith.constant 0.000000e+00 : f32
      %165 = vector.broadcast %cst_43 : f32 to vector<2x256xf32>
      %166 = arith.select %164, %163, %165 : vector<2x256xi1>, vector<2x256xf32>
      %167 = arith.addf %119, %166 : vector<2x256xf32>
      %c9 = arith.constant 9 : index
      %168 = memref.load %arg2[%c9] : memref<98xf32, #tpu.memory_space<smem>>
      %c58 = arith.constant 58 : index
      %169 = memref.load %arg2[%c58] : memref<98xf32, #tpu.memory_space<smem>>
      %170 = vector.broadcast %168 : f32 to vector<2x256xf32>
      %171 = arith.mulf %170, %25 : vector<2x256xf32>
      %172 = vector.broadcast %169 : f32 to vector<2x256xf32>
      %173 = arith.mulf %172, %26 : vector<2x256xf32>
      %174 = arith.addf %171, %173 : vector<2x256xf32>
      %c33_i32 = arith.constant 33 : i32
      %175 = tpu.dynamic_rotate %174 by %c33_i32 dim 1 : vector<2x256xf32>, i32 -> vector<2x256xf32>
      %176 = arith.andi %36, %50 : vector<2x256xi1>
      %cst_44 = arith.constant 0.000000e+00 : f32
      %177 = vector.broadcast %cst_44 : f32 to vector<2x256xf32>
      %178 = arith.select %176, %175, %177 : vector<2x256xi1>, vector<2x256xf32>
      %179 = arith.addf %131, %178 : vector<2x256xf32>
      %c10 = arith.constant 10 : index
      %180 = memref.load %arg2[%c10] : memref<98xf32, #tpu.memory_space<smem>>
      %c59 = arith.constant 59 : index
      %181 = memref.load %arg2[%c59] : memref<98xf32, #tpu.memory_space<smem>>
      %182 = vector.broadcast %180 : f32 to vector<2x256xf32>
      %183 = arith.mulf %182, %25 : vector<2x256xf32>
      %184 = vector.broadcast %181 : f32 to vector<2x256xf32>
      %185 = arith.mulf %184, %26 : vector<2x256xf32>
      %186 = arith.addf %183, %185 : vector<2x256xf32>
      %c32_i32 = arith.constant 32 : i32
      %187 = tpu.dynamic_rotate %186 by %c32_i32 dim 1 : vector<2x256xf32>, i32 -> vector<2x256xf32>
      %cst_45 = arith.constant 0.000000e+00 : f32
      %188 = vector.broadcast %cst_45 : f32 to vector<2x256xf32>
      %189 = arith.select %36, %187, %188 : vector<2x256xi1>, vector<2x256xf32>
      %190 = arith.addf %143, %189 : vector<2x256xf32>
      %c11 = arith.constant 11 : index
      %191 = memref.load %arg2[%c11] : memref<98xf32, #tpu.memory_space<smem>>
      %c60 = arith.constant 60 : index
      %192 = memref.load %arg2[%c60] : memref<98xf32, #tpu.memory_space<smem>>
      %193 = vector.broadcast %191 : f32 to vector<2x256xf32>
      %194 = arith.mulf %193, %25 : vector<2x256xf32>
      %195 = vector.broadcast %192 : f32 to vector<2x256xf32>
      %196 = arith.mulf %195, %26 : vector<2x256xf32>
      %197 = arith.addf %194, %196 : vector<2x256xf32>
      %c31_i32 = arith.constant 31 : i32
      %198 = tpu.dynamic_rotate %197 by %c31_i32 dim 1 : vector<2x256xf32>, i32 -> vector<2x256xf32>
      %199 = arith.andi %36, %52 : vector<2x256xi1>
      %cst_46 = arith.constant 0.000000e+00 : f32
      %200 = vector.broadcast %cst_46 : f32 to vector<2x256xf32>
      %201 = arith.select %199, %198, %200 : vector<2x256xi1>, vector<2x256xf32>
      %202 = arith.addf %155, %201 : vector<2x256xf32>
      %c12 = arith.constant 12 : index
      %203 = memref.load %arg2[%c12] : memref<98xf32, #tpu.memory_space<smem>>
      %c61 = arith.constant 61 : index
      %204 = memref.load %arg2[%c61] : memref<98xf32, #tpu.memory_space<smem>>
      %205 = vector.broadcast %203 : f32 to vector<2x256xf32>
      %206 = arith.mulf %205, %25 : vector<2x256xf32>
      %207 = vector.broadcast %204 : f32 to vector<2x256xf32>
      %208 = arith.mulf %207, %26 : vector<2x256xf32>
      %209 = arith.addf %206, %208 : vector<2x256xf32>
      %c30_i32 = arith.constant 30 : i32
      %210 = tpu.dynamic_rotate %209 by %c30_i32 dim 1 : vector<2x256xf32>, i32 -> vector<2x256xf32>
      %211 = arith.andi %36, %54 : vector<2x256xi1>
      %cst_47 = arith.constant 0.000000e+00 : f32
      %212 = vector.broadcast %cst_47 : f32 to vector<2x256xf32>
      %213 = arith.select %211, %210, %212 : vector<2x256xi1>, vector<2x256xf32>
      %214 = arith.addf %167, %213 : vector<2x256xf32>
      %c13 = arith.constant 13 : index
      %215 = memref.load %arg2[%c13] : memref<98xf32, #tpu.memory_space<smem>>
      %c62 = arith.constant 62 : index
      %216 = memref.load %arg2[%c62] : memref<98xf32, #tpu.memory_space<smem>>
      %217 = vector.broadcast %215 : f32 to vector<2x256xf32>
      %218 = arith.mulf %217, %25 : vector<2x256xf32>
      %219 = vector.broadcast %216 : f32 to vector<2x256xf32>
      %220 = arith.mulf %219, %26 : vector<2x256xf32>
      %221 = arith.addf %218, %220 : vector<2x256xf32>
      %c29_i32 = arith.constant 29 : i32
      %222 = tpu.dynamic_rotate %221 by %c29_i32 dim 1 : vector<2x256xf32>, i32 -> vector<2x256xf32>
      %223 = arith.andi %36, %56 : vector<2x256xi1>
      %cst_48 = arith.constant 0.000000e+00 : f32
      %224 = vector.broadcast %cst_48 : f32 to vector<2x256xf32>
      %225 = arith.select %223, %222, %224 : vector<2x256xi1>, vector<2x256xf32>
      %226 = arith.addf %179, %225 : vector<2x256xf32>
      %c14 = arith.constant 14 : index
      %227 = memref.load %arg2[%c14] : memref<98xf32, #tpu.memory_space<smem>>
      %c63 = arith.constant 63 : index
      %228 = memref.load %arg2[%c63] : memref<98xf32, #tpu.memory_space<smem>>
      %229 = vector.broadcast %227 : f32 to vector<2x256xf32>
      %230 = arith.mulf %229, %25 : vector<2x256xf32>
      %231 = vector.broadcast %228 : f32 to vector<2x256xf32>
      %232 = arith.mulf %231, %26 : vector<2x256xf32>
      %233 = arith.addf %230, %232 : vector<2x256xf32>
      %c19_i32 = arith.constant 19 : i32
      %234 = tpu.dynamic_rotate %233 by %c19_i32 dim 1 : vector<2x256xf32>, i32 -> vector<2x256xf32>
      %235 = arith.andi %38, %46 : vector<2x256xi1>
      %cst_49 = arith.constant 0.000000e+00 : f32
      %236 = vector.broadcast %cst_49 : f32 to vector<2x256xf32>
      %237 = arith.select %235, %234, %236 : vector<2x256xi1>, vector<2x256xf32>
      %238 = arith.addf %190, %237 : vector<2x256xf32>
      %c15 = arith.constant 15 : index
      %239 = memref.load %arg2[%c15] : memref<98xf32, #tpu.memory_space<smem>>
      %c64 = arith.constant 64 : index
      %240 = memref.load %arg2[%c64] : memref<98xf32, #tpu.memory_space<smem>>
      %241 = vector.broadcast %239 : f32 to vector<2x256xf32>
      %242 = arith.mulf %241, %25 : vector<2x256xf32>
      %243 = vector.broadcast %240 : f32 to vector<2x256xf32>
      %244 = arith.mulf %243, %26 : vector<2x256xf32>
      %245 = arith.addf %242, %244 : vector<2x256xf32>
      %c18_i32 = arith.constant 18 : i32
      %246 = tpu.dynamic_rotate %245 by %c18_i32 dim 1 : vector<2x256xf32>, i32 -> vector<2x256xf32>
      %247 = arith.andi %38, %48 : vector<2x256xi1>
      %cst_50 = arith.constant 0.000000e+00 : f32
      %248 = vector.broadcast %cst_50 : f32 to vector<2x256xf32>
      %249 = arith.select %247, %246, %248 : vector<2x256xi1>, vector<2x256xf32>
      %250 = arith.addf %202, %249 : vector<2x256xf32>
      %c16 = arith.constant 16 : index
      %251 = memref.load %arg2[%c16] : memref<98xf32, #tpu.memory_space<smem>>
      %c65 = arith.constant 65 : index
      %252 = memref.load %arg2[%c65] : memref<98xf32, #tpu.memory_space<smem>>
      %253 = vector.broadcast %251 : f32 to vector<2x256xf32>
      %254 = arith.mulf %253, %25 : vector<2x256xf32>
      %255 = vector.broadcast %252 : f32 to vector<2x256xf32>
      %256 = arith.mulf %255, %26 : vector<2x256xf32>
      %257 = arith.addf %254, %256 : vector<2x256xf32>
      %c17_i32 = arith.constant 17 : i32
      %258 = tpu.dynamic_rotate %257 by %c17_i32 dim 1 : vector<2x256xf32>, i32 -> vector<2x256xf32>
      %259 = arith.andi %38, %50 : vector<2x256xi1>
      %cst_51 = arith.constant 0.000000e+00 : f32
      %260 = vector.broadcast %cst_51 : f32 to vector<2x256xf32>
      %261 = arith.select %259, %258, %260 : vector<2x256xi1>, vector<2x256xf32>
      %262 = arith.addf %214, %261 : vector<2x256xf32>
      %c17 = arith.constant 17 : index
      %263 = memref.load %arg2[%c17] : memref<98xf32, #tpu.memory_space<smem>>
      %c66 = arith.constant 66 : index
      %264 = memref.load %arg2[%c66] : memref<98xf32, #tpu.memory_space<smem>>
      %265 = vector.broadcast %263 : f32 to vector<2x256xf32>
      %266 = arith.mulf %265, %25 : vector<2x256xf32>
      %267 = vector.broadcast %264 : f32 to vector<2x256xf32>
      %268 = arith.mulf %267, %26 : vector<2x256xf32>
      %269 = arith.addf %266, %268 : vector<2x256xf32>
      %c16_i32 = arith.constant 16 : i32
      %270 = tpu.dynamic_rotate %269 by %c16_i32 dim 1 : vector<2x256xf32>, i32 -> vector<2x256xf32>
      %cst_52 = arith.constant 0.000000e+00 : f32
      %271 = vector.broadcast %cst_52 : f32 to vector<2x256xf32>
      %272 = arith.select %38, %270, %271 : vector<2x256xi1>, vector<2x256xf32>
      %273 = arith.addf %226, %272 : vector<2x256xf32>
      %c18 = arith.constant 18 : index
      %274 = memref.load %arg2[%c18] : memref<98xf32, #tpu.memory_space<smem>>
      %c67 = arith.constant 67 : index
      %275 = memref.load %arg2[%c67] : memref<98xf32, #tpu.memory_space<smem>>
      %276 = vector.broadcast %274 : f32 to vector<2x256xf32>
      %277 = arith.mulf %276, %25 : vector<2x256xf32>
      %278 = vector.broadcast %275 : f32 to vector<2x256xf32>
      %279 = arith.mulf %278, %26 : vector<2x256xf32>
      %280 = arith.addf %277, %279 : vector<2x256xf32>
      %c15_i32_53 = arith.constant 15 : i32
      %281 = tpu.dynamic_rotate %280 by %c15_i32_53 dim 1 : vector<2x256xf32>, i32 -> vector<2x256xf32>
      %282 = arith.andi %38, %52 : vector<2x256xi1>
      %cst_54 = arith.constant 0.000000e+00 : f32
      %283 = vector.broadcast %cst_54 : f32 to vector<2x256xf32>
      %284 = arith.select %282, %281, %283 : vector<2x256xi1>, vector<2x256xf32>
      %285 = arith.addf %238, %284 : vector<2x256xf32>
      %c19 = arith.constant 19 : index
      %286 = memref.load %arg2[%c19] : memref<98xf32, #tpu.memory_space<smem>>
      %c68 = arith.constant 68 : index
      %287 = memref.load %arg2[%c68] : memref<98xf32, #tpu.memory_space<smem>>
      %288 = vector.broadcast %286 : f32 to vector<2x256xf32>
      %289 = arith.mulf %288, %25 : vector<2x256xf32>
      %290 = vector.broadcast %287 : f32 to vector<2x256xf32>
      %291 = arith.mulf %290, %26 : vector<2x256xf32>
      %292 = arith.addf %289, %291 : vector<2x256xf32>
      %c14_i32_55 = arith.constant 14 : i32
      %293 = tpu.dynamic_rotate %292 by %c14_i32_55 dim 1 : vector<2x256xf32>, i32 -> vector<2x256xf32>
      %294 = arith.andi %38, %54 : vector<2x256xi1>
      %cst_56 = arith.constant 0.000000e+00 : f32
      %295 = vector.broadcast %cst_56 : f32 to vector<2x256xf32>
      %296 = arith.select %294, %293, %295 : vector<2x256xi1>, vector<2x256xf32>
      %297 = arith.addf %250, %296 : vector<2x256xf32>
      %c20 = arith.constant 20 : index
      %298 = memref.load %arg2[%c20] : memref<98xf32, #tpu.memory_space<smem>>
      %c69 = arith.constant 69 : index
      %299 = memref.load %arg2[%c69] : memref<98xf32, #tpu.memory_space<smem>>
      %300 = vector.broadcast %298 : f32 to vector<2x256xf32>
      %301 = arith.mulf %300, %25 : vector<2x256xf32>
      %302 = vector.broadcast %299 : f32 to vector<2x256xf32>
      %303 = arith.mulf %302, %26 : vector<2x256xf32>
      %304 = arith.addf %301, %303 : vector<2x256xf32>
      %c13_i32_57 = arith.constant 13 : i32
      %305 = tpu.dynamic_rotate %304 by %c13_i32_57 dim 1 : vector<2x256xf32>, i32 -> vector<2x256xf32>
      %306 = arith.andi %38, %56 : vector<2x256xi1>
      %cst_58 = arith.constant 0.000000e+00 : f32
      %307 = vector.broadcast %cst_58 : f32 to vector<2x256xf32>
      %308 = arith.select %306, %305, %307 : vector<2x256xi1>, vector<2x256xf32>
      %309 = arith.addf %262, %308 : vector<2x256xf32>
      %c21 = arith.constant 21 : index
      %310 = memref.load %arg2[%c21] : memref<98xf32, #tpu.memory_space<smem>>
      %c70 = arith.constant 70 : index
      %311 = memref.load %arg2[%c70] : memref<98xf32, #tpu.memory_space<smem>>
      %312 = vector.broadcast %310 : f32 to vector<2x256xf32>
      %313 = arith.mulf %312, %25 : vector<2x256xf32>
      %314 = vector.broadcast %311 : f32 to vector<2x256xf32>
      %315 = arith.mulf %314, %26 : vector<2x256xf32>
      %316 = arith.addf %313, %315 : vector<2x256xf32>
      %c3_i32_59 = arith.constant 3 : i32
      %317 = tpu.dynamic_rotate %316 by %c3_i32_59 dim 1 : vector<2x256xf32>, i32 -> vector<2x256xf32>
      %cst_60 = arith.constant 0.000000e+00 : f32
      %318 = vector.broadcast %cst_60 : f32 to vector<2x256xf32>
      %319 = arith.select %46, %317, %318 : vector<2x256xi1>, vector<2x256xf32>
      %320 = arith.addf %273, %319 : vector<2x256xf32>
      %c22 = arith.constant 22 : index
      %321 = memref.load %arg2[%c22] : memref<98xf32, #tpu.memory_space<smem>>
      %c71 = arith.constant 71 : index
      %322 = memref.load %arg2[%c71] : memref<98xf32, #tpu.memory_space<smem>>
      %323 = vector.broadcast %321 : f32 to vector<2x256xf32>
      %324 = arith.mulf %323, %25 : vector<2x256xf32>
      %325 = vector.broadcast %322 : f32 to vector<2x256xf32>
      %326 = arith.mulf %325, %26 : vector<2x256xf32>
      %327 = arith.addf %324, %326 : vector<2x256xf32>
      %c2_i32_61 = arith.constant 2 : i32
      %328 = tpu.dynamic_rotate %327 by %c2_i32_61 dim 1 : vector<2x256xf32>, i32 -> vector<2x256xf32>
      %cst_62 = arith.constant 0.000000e+00 : f32
      %329 = vector.broadcast %cst_62 : f32 to vector<2x256xf32>
      %330 = arith.select %48, %328, %329 : vector<2x256xi1>, vector<2x256xf32>
      %331 = arith.addf %285, %330 : vector<2x256xf32>
      %c23 = arith.constant 23 : index
      %332 = memref.load %arg2[%c23] : memref<98xf32, #tpu.memory_space<smem>>
      %c72 = arith.constant 72 : index
      %333 = memref.load %arg2[%c72] : memref<98xf32, #tpu.memory_space<smem>>
      %334 = vector.broadcast %332 : f32 to vector<2x256xf32>
      %335 = arith.mulf %334, %25 : vector<2x256xf32>
      %336 = vector.broadcast %333 : f32 to vector<2x256xf32>
      %337 = arith.mulf %336, %26 : vector<2x256xf32>
      %338 = arith.addf %335, %337 : vector<2x256xf32>
      %c1_i32_63 = arith.constant 1 : i32
      %339 = tpu.dynamic_rotate %338 by %c1_i32_63 dim 1 : vector<2x256xf32>, i32 -> vector<2x256xf32>
      %cst_64 = arith.constant 0.000000e+00 : f32
      %340 = vector.broadcast %cst_64 : f32 to vector<2x256xf32>
      %341 = arith.select %50, %339, %340 : vector<2x256xi1>, vector<2x256xf32>
      %342 = arith.addf %297, %341 : vector<2x256xf32>
      %c24 = arith.constant 24 : index
      %343 = memref.load %arg2[%c24] : memref<98xf32, #tpu.memory_space<smem>>
      %c73 = arith.constant 73 : index
      %344 = memref.load %arg2[%c73] : memref<98xf32, #tpu.memory_space<smem>>
      %345 = vector.broadcast %343 : f32 to vector<2x256xf32>
      %346 = arith.mulf %345, %25 : vector<2x256xf32>
      %347 = vector.broadcast %344 : f32 to vector<2x256xf32>
      %348 = arith.mulf %347, %26 : vector<2x256xf32>
      %349 = arith.addf %346, %348 : vector<2x256xf32>
      %350 = arith.addf %309, %349 : vector<2x256xf32>
      %c25 = arith.constant 25 : index
      %351 = memref.load %arg2[%c25] : memref<98xf32, #tpu.memory_space<smem>>
      %c74 = arith.constant 74 : index
      %352 = memref.load %arg2[%c74] : memref<98xf32, #tpu.memory_space<smem>>
      %353 = vector.broadcast %351 : f32 to vector<2x256xf32>
      %354 = arith.mulf %353, %25 : vector<2x256xf32>
      %355 = vector.broadcast %352 : f32 to vector<2x256xf32>
      %356 = arith.mulf %355, %26 : vector<2x256xf32>
      %357 = arith.addf %354, %356 : vector<2x256xf32>
      %c255_i32 = arith.constant 255 : i32
      %358 = tpu.dynamic_rotate %357 by %c255_i32 dim 1 : vector<2x256xf32>, i32 -> vector<2x256xf32>
      %cst_65 = arith.constant 0.000000e+00 : f32
      %359 = vector.broadcast %cst_65 : f32 to vector<2x256xf32>
      %360 = arith.select %52, %358, %359 : vector<2x256xi1>, vector<2x256xf32>
      %361 = arith.addf %320, %360 : vector<2x256xf32>
      %c26 = arith.constant 26 : index
      %362 = memref.load %arg2[%c26] : memref<98xf32, #tpu.memory_space<smem>>
      %c75 = arith.constant 75 : index
      %363 = memref.load %arg2[%c75] : memref<98xf32, #tpu.memory_space<smem>>
      %364 = vector.broadcast %362 : f32 to vector<2x256xf32>
      %365 = arith.mulf %364, %25 : vector<2x256xf32>
      %366 = vector.broadcast %363 : f32 to vector<2x256xf32>
      %367 = arith.mulf %366, %26 : vector<2x256xf32>
      %368 = arith.addf %365, %367 : vector<2x256xf32>
      %c254_i32 = arith.constant 254 : i32
      %369 = tpu.dynamic_rotate %368 by %c254_i32 dim 1 : vector<2x256xf32>, i32 -> vector<2x256xf32>
      %cst_66 = arith.constant 0.000000e+00 : f32
      %370 = vector.broadcast %cst_66 : f32 to vector<2x256xf32>
      %371 = arith.select %54, %369, %370 : vector<2x256xi1>, vector<2x256xf32>
      %372 = arith.addf %331, %371 : vector<2x256xf32>
      %c27 = arith.constant 27 : index
      %373 = memref.load %arg2[%c27] : memref<98xf32, #tpu.memory_space<smem>>
      %c76 = arith.constant 76 : index
      %374 = memref.load %arg2[%c76] : memref<98xf32, #tpu.memory_space<smem>>
      %375 = vector.broadcast %373 : f32 to vector<2x256xf32>
      %376 = arith.mulf %375, %25 : vector<2x256xf32>
      %377 = vector.broadcast %374 : f32 to vector<2x256xf32>
      %378 = arith.mulf %377, %26 : vector<2x256xf32>
      %379 = arith.addf %376, %378 : vector<2x256xf32>
      %c253_i32 = arith.constant 253 : i32
      %380 = tpu.dynamic_rotate %379 by %c253_i32 dim 1 : vector<2x256xf32>, i32 -> vector<2x256xf32>
      %cst_67 = arith.constant 0.000000e+00 : f32
      %381 = vector.broadcast %cst_67 : f32 to vector<2x256xf32>
      %382 = arith.select %56, %380, %381 : vector<2x256xi1>, vector<2x256xf32>
      %383 = arith.addf %342, %382 : vector<2x256xf32>
      %c28 = arith.constant 28 : index
      %384 = memref.load %arg2[%c28] : memref<98xf32, #tpu.memory_space<smem>>
      %c77 = arith.constant 77 : index
      %385 = memref.load %arg2[%c77] : memref<98xf32, #tpu.memory_space<smem>>
      %386 = vector.broadcast %384 : f32 to vector<2x256xf32>
      %387 = arith.mulf %386, %25 : vector<2x256xf32>
      %388 = vector.broadcast %385 : f32 to vector<2x256xf32>
      %389 = arith.mulf %388, %26 : vector<2x256xf32>
      %390 = arith.addf %387, %389 : vector<2x256xf32>
      %c243_i32 = arith.constant 243 : i32
      %391 = tpu.dynamic_rotate %390 by %c243_i32 dim 1 : vector<2x256xf32>, i32 -> vector<2x256xf32>
      %392 = arith.andi %40, %46 : vector<2x256xi1>
      %cst_68 = arith.constant 0.000000e+00 : f32
      %393 = vector.broadcast %cst_68 : f32 to vector<2x256xf32>
      %394 = arith.select %392, %391, %393 : vector<2x256xi1>, vector<2x256xf32>
      %395 = arith.addf %350, %394 : vector<2x256xf32>
      %c29 = arith.constant 29 : index
      %396 = memref.load %arg2[%c29] : memref<98xf32, #tpu.memory_space<smem>>
      %c78 = arith.constant 78 : index
      %397 = memref.load %arg2[%c78] : memref<98xf32, #tpu.memory_space<smem>>
      %398 = vector.broadcast %396 : f32 to vector<2x256xf32>
      %399 = arith.mulf %398, %25 : vector<2x256xf32>
      %400 = vector.broadcast %397 : f32 to vector<2x256xf32>
      %401 = arith.mulf %400, %26 : vector<2x256xf32>
      %402 = arith.addf %399, %401 : vector<2x256xf32>
      %c242_i32 = arith.constant 242 : i32
      %403 = tpu.dynamic_rotate %402 by %c242_i32 dim 1 : vector<2x256xf32>, i32 -> vector<2x256xf32>
      %404 = arith.andi %40, %48 : vector<2x256xi1>
      %cst_69 = arith.constant 0.000000e+00 : f32
      %405 = vector.broadcast %cst_69 : f32 to vector<2x256xf32>
      %406 = arith.select %404, %403, %405 : vector<2x256xi1>, vector<2x256xf32>
      %407 = arith.addf %361, %406 : vector<2x256xf32>
      %c30 = arith.constant 30 : index
      %408 = memref.load %arg2[%c30] : memref<98xf32, #tpu.memory_space<smem>>
      %c79 = arith.constant 79 : index
      %409 = memref.load %arg2[%c79] : memref<98xf32, #tpu.memory_space<smem>>
      %410 = vector.broadcast %408 : f32 to vector<2x256xf32>
      %411 = arith.mulf %410, %25 : vector<2x256xf32>
      %412 = vector.broadcast %409 : f32 to vector<2x256xf32>
      %413 = arith.mulf %412, %26 : vector<2x256xf32>
      %414 = arith.addf %411, %413 : vector<2x256xf32>
      %c241_i32 = arith.constant 241 : i32
      %415 = tpu.dynamic_rotate %414 by %c241_i32 dim 1 : vector<2x256xf32>, i32 -> vector<2x256xf32>
      %416 = arith.andi %40, %50 : vector<2x256xi1>
      %cst_70 = arith.constant 0.000000e+00 : f32
      %417 = vector.broadcast %cst_70 : f32 to vector<2x256xf32>
      %418 = arith.select %416, %415, %417 : vector<2x256xi1>, vector<2x256xf32>
      %419 = arith.addf %372, %418 : vector<2x256xf32>
      %c31 = arith.constant 31 : index
      %420 = memref.load %arg2[%c31] : memref<98xf32, #tpu.memory_space<smem>>
      %c80 = arith.constant 80 : index
      %421 = memref.load %arg2[%c80] : memref<98xf32, #tpu.memory_space<smem>>
      %422 = vector.broadcast %420 : f32 to vector<2x256xf32>
      %423 = arith.mulf %422, %25 : vector<2x256xf32>
      %424 = vector.broadcast %421 : f32 to vector<2x256xf32>
      %425 = arith.mulf %424, %26 : vector<2x256xf32>
      %426 = arith.addf %423, %425 : vector<2x256xf32>
      %c240_i32 = arith.constant 240 : i32
      %427 = tpu.dynamic_rotate %426 by %c240_i32 dim 1 : vector<2x256xf32>, i32 -> vector<2x256xf32>
      %cst_71 = arith.constant 0.000000e+00 : f32
      %428 = vector.broadcast %cst_71 : f32 to vector<2x256xf32>
      %429 = arith.select %40, %427, %428 : vector<2x256xi1>, vector<2x256xf32>
      %430 = arith.addf %383, %429 : vector<2x256xf32>
      %c32 = arith.constant 32 : index
      %431 = memref.load %arg2[%c32] : memref<98xf32, #tpu.memory_space<smem>>
      %c81 = arith.constant 81 : index
      %432 = memref.load %arg2[%c81] : memref<98xf32, #tpu.memory_space<smem>>
      %433 = vector.broadcast %431 : f32 to vector<2x256xf32>
      %434 = arith.mulf %433, %25 : vector<2x256xf32>
      %435 = vector.broadcast %432 : f32 to vector<2x256xf32>
      %436 = arith.mulf %435, %26 : vector<2x256xf32>
      %437 = arith.addf %434, %436 : vector<2x256xf32>
      %c239_i32 = arith.constant 239 : i32
      %438 = tpu.dynamic_rotate %437 by %c239_i32 dim 1 : vector<2x256xf32>, i32 -> vector<2x256xf32>
      %439 = arith.andi %40, %52 : vector<2x256xi1>
      %cst_72 = arith.constant 0.000000e+00 : f32
      %440 = vector.broadcast %cst_72 : f32 to vector<2x256xf32>
      %441 = arith.select %439, %438, %440 : vector<2x256xi1>, vector<2x256xf32>
      %442 = arith.addf %395, %441 : vector<2x256xf32>
      %c33 = arith.constant 33 : index
      %443 = memref.load %arg2[%c33] : memref<98xf32, #tpu.memory_space<smem>>
      %c82 = arith.constant 82 : index
      %444 = memref.load %arg2[%c82] : memref<98xf32, #tpu.memory_space<smem>>
      %445 = vector.broadcast %443 : f32 to vector<2x256xf32>
      %446 = arith.mulf %445, %25 : vector<2x256xf32>
      %447 = vector.broadcast %444 : f32 to vector<2x256xf32>
      %448 = arith.mulf %447, %26 : vector<2x256xf32>
      %449 = arith.addf %446, %448 : vector<2x256xf32>
      %c238_i32 = arith.constant 238 : i32
      %450 = tpu.dynamic_rotate %449 by %c238_i32 dim 1 : vector<2x256xf32>, i32 -> vector<2x256xf32>
      %451 = arith.andi %40, %54 : vector<2x256xi1>
      %cst_73 = arith.constant 0.000000e+00 : f32
      %452 = vector.broadcast %cst_73 : f32 to vector<2x256xf32>
      %453 = arith.select %451, %450, %452 : vector<2x256xi1>, vector<2x256xf32>
      %454 = arith.addf %407, %453 : vector<2x256xf32>
      %c34 = arith.constant 34 : index
      %455 = memref.load %arg2[%c34] : memref<98xf32, #tpu.memory_space<smem>>
      %c83 = arith.constant 83 : index
      %456 = memref.load %arg2[%c83] : memref<98xf32, #tpu.memory_space<smem>>
      %457 = vector.broadcast %455 : f32 to vector<2x256xf32>
      %458 = arith.mulf %457, %25 : vector<2x256xf32>
      %459 = vector.broadcast %456 : f32 to vector<2x256xf32>
      %460 = arith.mulf %459, %26 : vector<2x256xf32>
      %461 = arith.addf %458, %460 : vector<2x256xf32>
      %c237_i32 = arith.constant 237 : i32
      %462 = tpu.dynamic_rotate %461 by %c237_i32 dim 1 : vector<2x256xf32>, i32 -> vector<2x256xf32>
      %463 = arith.andi %40, %56 : vector<2x256xi1>
      %cst_74 = arith.constant 0.000000e+00 : f32
      %464 = vector.broadcast %cst_74 : f32 to vector<2x256xf32>
      %465 = arith.select %463, %462, %464 : vector<2x256xi1>, vector<2x256xf32>
      %466 = arith.addf %419, %465 : vector<2x256xf32>
      %c35 = arith.constant 35 : index
      %467 = memref.load %arg2[%c35] : memref<98xf32, #tpu.memory_space<smem>>
      %c84 = arith.constant 84 : index
      %468 = memref.load %arg2[%c84] : memref<98xf32, #tpu.memory_space<smem>>
      %469 = vector.broadcast %467 : f32 to vector<2x256xf32>
      %470 = arith.mulf %469, %25 : vector<2x256xf32>
      %471 = vector.broadcast %468 : f32 to vector<2x256xf32>
      %472 = arith.mulf %471, %26 : vector<2x256xf32>
      %473 = arith.addf %470, %472 : vector<2x256xf32>
      %c227_i32 = arith.constant 227 : i32
      %474 = tpu.dynamic_rotate %473 by %c227_i32 dim 1 : vector<2x256xf32>, i32 -> vector<2x256xf32>
      %475 = arith.andi %42, %46 : vector<2x256xi1>
      %cst_75 = arith.constant 0.000000e+00 : f32
      %476 = vector.broadcast %cst_75 : f32 to vector<2x256xf32>
      %477 = arith.select %475, %474, %476 : vector<2x256xi1>, vector<2x256xf32>
      %478 = arith.addf %430, %477 : vector<2x256xf32>
      %c36 = arith.constant 36 : index
      %479 = memref.load %arg2[%c36] : memref<98xf32, #tpu.memory_space<smem>>
      %c85 = arith.constant 85 : index
      %480 = memref.load %arg2[%c85] : memref<98xf32, #tpu.memory_space<smem>>
      %481 = vector.broadcast %479 : f32 to vector<2x256xf32>
      %482 = arith.mulf %481, %25 : vector<2x256xf32>
      %483 = vector.broadcast %480 : f32 to vector<2x256xf32>
      %484 = arith.mulf %483, %26 : vector<2x256xf32>
      %485 = arith.addf %482, %484 : vector<2x256xf32>
      %c226_i32 = arith.constant 226 : i32
      %486 = tpu.dynamic_rotate %485 by %c226_i32 dim 1 : vector<2x256xf32>, i32 -> vector<2x256xf32>
      %487 = arith.andi %42, %48 : vector<2x256xi1>
      %cst_76 = arith.constant 0.000000e+00 : f32
      %488 = vector.broadcast %cst_76 : f32 to vector<2x256xf32>
      %489 = arith.select %487, %486, %488 : vector<2x256xi1>, vector<2x256xf32>
      %490 = arith.addf %442, %489 : vector<2x256xf32>
      %c37 = arith.constant 37 : index
      %491 = memref.load %arg2[%c37] : memref<98xf32, #tpu.memory_space<smem>>
      %c86 = arith.constant 86 : index
      %492 = memref.load %arg2[%c86] : memref<98xf32, #tpu.memory_space<smem>>
      %493 = vector.broadcast %491 : f32 to vector<2x256xf32>
      %494 = arith.mulf %493, %25 : vector<2x256xf32>
      %495 = vector.broadcast %492 : f32 to vector<2x256xf32>
      %496 = arith.mulf %495, %26 : vector<2x256xf32>
      %497 = arith.addf %494, %496 : vector<2x256xf32>
      %c225_i32 = arith.constant 225 : i32
      %498 = tpu.dynamic_rotate %497 by %c225_i32 dim 1 : vector<2x256xf32>, i32 -> vector<2x256xf32>
      %499 = arith.andi %42, %50 : vector<2x256xi1>
      %cst_77 = arith.constant 0.000000e+00 : f32
      %500 = vector.broadcast %cst_77 : f32 to vector<2x256xf32>
      %501 = arith.select %499, %498, %500 : vector<2x256xi1>, vector<2x256xf32>
      %502 = arith.addf %454, %501 : vector<2x256xf32>
      %c38 = arith.constant 38 : index
      %503 = memref.load %arg2[%c38] : memref<98xf32, #tpu.memory_space<smem>>
      %c87 = arith.constant 87 : index
      %504 = memref.load %arg2[%c87] : memref<98xf32, #tpu.memory_space<smem>>
      %505 = vector.broadcast %503 : f32 to vector<2x256xf32>
      %506 = arith.mulf %505, %25 : vector<2x256xf32>
      %507 = vector.broadcast %504 : f32 to vector<2x256xf32>
      %508 = arith.mulf %507, %26 : vector<2x256xf32>
      %509 = arith.addf %506, %508 : vector<2x256xf32>
      %c224_i32 = arith.constant 224 : i32
      %510 = tpu.dynamic_rotate %509 by %c224_i32 dim 1 : vector<2x256xf32>, i32 -> vector<2x256xf32>
      %cst_78 = arith.constant 0.000000e+00 : f32
      %511 = vector.broadcast %cst_78 : f32 to vector<2x256xf32>
      %512 = arith.select %42, %510, %511 : vector<2x256xi1>, vector<2x256xf32>
      %513 = arith.addf %466, %512 : vector<2x256xf32>
      %c39 = arith.constant 39 : index
      %514 = memref.load %arg2[%c39] : memref<98xf32, #tpu.memory_space<smem>>
      %c88 = arith.constant 88 : index
      %515 = memref.load %arg2[%c88] : memref<98xf32, #tpu.memory_space<smem>>
      %516 = vector.broadcast %514 : f32 to vector<2x256xf32>
      %517 = arith.mulf %516, %25 : vector<2x256xf32>
      %518 = vector.broadcast %515 : f32 to vector<2x256xf32>
      %519 = arith.mulf %518, %26 : vector<2x256xf32>
      %520 = arith.addf %517, %519 : vector<2x256xf32>
      %c223_i32 = arith.constant 223 : i32
      %521 = tpu.dynamic_rotate %520 by %c223_i32 dim 1 : vector<2x256xf32>, i32 -> vector<2x256xf32>
      %522 = arith.andi %42, %52 : vector<2x256xi1>
      %cst_79 = arith.constant 0.000000e+00 : f32
      %523 = vector.broadcast %cst_79 : f32 to vector<2x256xf32>
      %524 = arith.select %522, %521, %523 : vector<2x256xi1>, vector<2x256xf32>
      %525 = arith.addf %478, %524 : vector<2x256xf32>
      %c40 = arith.constant 40 : index
      %526 = memref.load %arg2[%c40] : memref<98xf32, #tpu.memory_space<smem>>
      %c89 = arith.constant 89 : index
      %527 = memref.load %arg2[%c89] : memref<98xf32, #tpu.memory_space<smem>>
      %528 = vector.broadcast %526 : f32 to vector<2x256xf32>
      %529 = arith.mulf %528, %25 : vector<2x256xf32>
      %530 = vector.broadcast %527 : f32 to vector<2x256xf32>
      %531 = arith.mulf %530, %26 : vector<2x256xf32>
      %532 = arith.addf %529, %531 : vector<2x256xf32>
      %c222_i32 = arith.constant 222 : i32
      %533 = tpu.dynamic_rotate %532 by %c222_i32 dim 1 : vector<2x256xf32>, i32 -> vector<2x256xf32>
      %534 = arith.andi %42, %54 : vector<2x256xi1>
      %cst_80 = arith.constant 0.000000e+00 : f32
      %535 = vector.broadcast %cst_80 : f32 to vector<2x256xf32>
      %536 = arith.select %534, %533, %535 : vector<2x256xi1>, vector<2x256xf32>
      %537 = arith.addf %490, %536 : vector<2x256xf32>
      %c41 = arith.constant 41 : index
      %538 = memref.load %arg2[%c41] : memref<98xf32, #tpu.memory_space<smem>>
      %c90 = arith.constant 90 : index
      %539 = memref.load %arg2[%c90] : memref<98xf32, #tpu.memory_space<smem>>
      %540 = vector.broadcast %538 : f32 to vector<2x256xf32>
      %541 = arith.mulf %540, %25 : vector<2x256xf32>
      %542 = vector.broadcast %539 : f32 to vector<2x256xf32>
      %543 = arith.mulf %542, %26 : vector<2x256xf32>
      %544 = arith.addf %541, %543 : vector<2x256xf32>
      %c221_i32 = arith.constant 221 : i32
      %545 = tpu.dynamic_rotate %544 by %c221_i32 dim 1 : vector<2x256xf32>, i32 -> vector<2x256xf32>
      %546 = arith.andi %42, %56 : vector<2x256xi1>
      %cst_81 = arith.constant 0.000000e+00 : f32
      %547 = vector.broadcast %cst_81 : f32 to vector<2x256xf32>
      %548 = arith.select %546, %545, %547 : vector<2x256xi1>, vector<2x256xf32>
      %549 = arith.addf %502, %548 : vector<2x256xf32>
      %c42 = arith.constant 42 : index
      %550 = memref.load %arg2[%c42] : memref<98xf32, #tpu.memory_space<smem>>
      %c91 = arith.constant 91 : index
      %551 = memref.load %arg2[%c91] : memref<98xf32, #tpu.memory_space<smem>>
      %552 = vector.broadcast %550 : f32 to vector<2x256xf32>
      %553 = arith.mulf %552, %25 : vector<2x256xf32>
      %554 = vector.broadcast %551 : f32 to vector<2x256xf32>
      %555 = arith.mulf %554, %26 : vector<2x256xf32>
      %556 = arith.addf %553, %555 : vector<2x256xf32>
      %c211_i32 = arith.constant 211 : i32
      %557 = tpu.dynamic_rotate %556 by %c211_i32 dim 1 : vector<2x256xf32>, i32 -> vector<2x256xf32>
      %558 = arith.andi %44, %46 : vector<2x256xi1>
      %cst_82 = arith.constant 0.000000e+00 : f32
      %559 = vector.broadcast %cst_82 : f32 to vector<2x256xf32>
      %560 = arith.select %558, %557, %559 : vector<2x256xi1>, vector<2x256xf32>
      %561 = arith.addf %513, %560 : vector<2x256xf32>
      %c43 = arith.constant 43 : index
      %562 = memref.load %arg2[%c43] : memref<98xf32, #tpu.memory_space<smem>>
      %c92 = arith.constant 92 : index
      %563 = memref.load %arg2[%c92] : memref<98xf32, #tpu.memory_space<smem>>
      %564 = vector.broadcast %562 : f32 to vector<2x256xf32>
      %565 = arith.mulf %564, %25 : vector<2x256xf32>
      %566 = vector.broadcast %563 : f32 to vector<2x256xf32>
      %567 = arith.mulf %566, %26 : vector<2x256xf32>
      %568 = arith.addf %565, %567 : vector<2x256xf32>
      %c210_i32 = arith.constant 210 : i32
      %569 = tpu.dynamic_rotate %568 by %c210_i32 dim 1 : vector<2x256xf32>, i32 -> vector<2x256xf32>
      %570 = arith.andi %44, %48 : vector<2x256xi1>
      %cst_83 = arith.constant 0.000000e+00 : f32
      %571 = vector.broadcast %cst_83 : f32 to vector<2x256xf32>
      %572 = arith.select %570, %569, %571 : vector<2x256xi1>, vector<2x256xf32>
      %573 = arith.addf %525, %572 : vector<2x256xf32>
      %c44 = arith.constant 44 : index
      %574 = memref.load %arg2[%c44] : memref<98xf32, #tpu.memory_space<smem>>
      %c93 = arith.constant 93 : index
      %575 = memref.load %arg2[%c93] : memref<98xf32, #tpu.memory_space<smem>>
      %576 = vector.broadcast %574 : f32 to vector<2x256xf32>
      %577 = arith.mulf %576, %25 : vector<2x256xf32>
      %578 = vector.broadcast %575 : f32 to vector<2x256xf32>
      %579 = arith.mulf %578, %26 : vector<2x256xf32>
      %580 = arith.addf %577, %579 : vector<2x256xf32>
      %c209_i32 = arith.constant 209 : i32
      %581 = tpu.dynamic_rotate %580 by %c209_i32 dim 1 : vector<2x256xf32>, i32 -> vector<2x256xf32>
      %582 = arith.andi %44, %50 : vector<2x256xi1>
      %cst_84 = arith.constant 0.000000e+00 : f32
      %583 = vector.broadcast %cst_84 : f32 to vector<2x256xf32>
      %584 = arith.select %582, %581, %583 : vector<2x256xi1>, vector<2x256xf32>
      %585 = arith.addf %537, %584 : vector<2x256xf32>
      %c45 = arith.constant 45 : index
      %586 = memref.load %arg2[%c45] : memref<98xf32, #tpu.memory_space<smem>>
      %c94 = arith.constant 94 : index
      %587 = memref.load %arg2[%c94] : memref<98xf32, #tpu.memory_space<smem>>
      %588 = vector.broadcast %586 : f32 to vector<2x256xf32>
      %589 = arith.mulf %588, %25 : vector<2x256xf32>
      %590 = vector.broadcast %587 : f32 to vector<2x256xf32>
      %591 = arith.mulf %590, %26 : vector<2x256xf32>
      %592 = arith.addf %589, %591 : vector<2x256xf32>
      %c208_i32 = arith.constant 208 : i32
      %593 = tpu.dynamic_rotate %592 by %c208_i32 dim 1 : vector<2x256xf32>, i32 -> vector<2x256xf32>
      %cst_85 = arith.constant 0.000000e+00 : f32
      %594 = vector.broadcast %cst_85 : f32 to vector<2x256xf32>
      %595 = arith.select %44, %593, %594 : vector<2x256xi1>, vector<2x256xf32>
      %596 = arith.addf %549, %595 : vector<2x256xf32>
      %c46 = arith.constant 46 : index
      %597 = memref.load %arg2[%c46] : memref<98xf32, #tpu.memory_space<smem>>
      %c95 = arith.constant 95 : index
      %598 = memref.load %arg2[%c95] : memref<98xf32, #tpu.memory_space<smem>>
      %599 = vector.broadcast %597 : f32 to vector<2x256xf32>
      %600 = arith.mulf %599, %25 : vector<2x256xf32>
      %601 = vector.broadcast %598 : f32 to vector<2x256xf32>
      %602 = arith.mulf %601, %26 : vector<2x256xf32>
      %603 = arith.addf %600, %602 : vector<2x256xf32>
      %c207_i32 = arith.constant 207 : i32
      %604 = tpu.dynamic_rotate %603 by %c207_i32 dim 1 : vector<2x256xf32>, i32 -> vector<2x256xf32>
      %605 = arith.andi %44, %52 : vector<2x256xi1>
      %cst_86 = arith.constant 0.000000e+00 : f32
      %606 = vector.broadcast %cst_86 : f32 to vector<2x256xf32>
      %607 = arith.select %605, %604, %606 : vector<2x256xi1>, vector<2x256xf32>
      %608 = arith.addf %561, %607 : vector<2x256xf32>
      %c47 = arith.constant 47 : index
      %609 = memref.load %arg2[%c47] : memref<98xf32, #tpu.memory_space<smem>>
      %c96 = arith.constant 96 : index
      %610 = memref.load %arg2[%c96] : memref<98xf32, #tpu.memory_space<smem>>
      %611 = vector.broadcast %609 : f32 to vector<2x256xf32>
      %612 = arith.mulf %611, %25 : vector<2x256xf32>
      %613 = vector.broadcast %610 : f32 to vector<2x256xf32>
      %614 = arith.mulf %613, %26 : vector<2x256xf32>
      %615 = arith.addf %612, %614 : vector<2x256xf32>
      %c206_i32 = arith.constant 206 : i32
      %616 = tpu.dynamic_rotate %615 by %c206_i32 dim 1 : vector<2x256xf32>, i32 -> vector<2x256xf32>
      %617 = arith.andi %44, %54 : vector<2x256xi1>
      %cst_87 = arith.constant 0.000000e+00 : f32
      %618 = vector.broadcast %cst_87 : f32 to vector<2x256xf32>
      %619 = arith.select %617, %616, %618 : vector<2x256xi1>, vector<2x256xf32>
      %620 = arith.addf %573, %619 : vector<2x256xf32>
      %c48 = arith.constant 48 : index
      %621 = memref.load %arg2[%c48] : memref<98xf32, #tpu.memory_space<smem>>
      %c97 = arith.constant 97 : index
      %622 = memref.load %arg2[%c97] : memref<98xf32, #tpu.memory_space<smem>>
      %623 = vector.broadcast %621 : f32 to vector<2x256xf32>
      %624 = arith.mulf %623, %25 : vector<2x256xf32>
      %625 = vector.broadcast %622 : f32 to vector<2x256xf32>
      %626 = arith.mulf %625, %26 : vector<2x256xf32>
      %627 = arith.addf %624, %626 : vector<2x256xf32>
      %c205_i32 = arith.constant 205 : i32
      %628 = tpu.dynamic_rotate %627 by %c205_i32 dim 1 : vector<2x256xf32>, i32 -> vector<2x256xf32>
      %629 = arith.andi %44, %56 : vector<2x256xi1>
      %cst_88 = arith.constant 0.000000e+00 : f32
      %630 = vector.broadcast %cst_88 : f32 to vector<2x256xf32>
      %631 = arith.select %629, %628, %630 : vector<2x256xi1>, vector<2x256xf32>
      %632 = arith.addf %585, %631 : vector<2x256xf32>
      %633 = arith.addf %632, %596 : vector<2x256xf32>
      %634 = arith.addf %608, %620 : vector<2x256xf32>
      %635 = arith.addf %633, %634 : vector<2x256xf32>
      %636 = arith.negf %635 : vector<2x256xf32>
      %637 = math.exp %636 : vector<2x256xf32>
      %cst_89 = arith.constant 1.000000e+00 : f32
      %638 = vector.broadcast %cst_89 : f32 to vector<2x256xf32>
      %639 = arith.addf %638, %637 : vector<2x256xf32>
      %640 = arith.divf %638, %639 : vector<2x256xf32>
      %c0_90 = arith.constant 0 : index
      %c0_91 = arith.constant 0 : index
      %641 = vector.load %arg5[%c0_90, %c0_91] : memref<2x256xf32, #tpu.memory_space<vmem>>, vector<2x256xf32>
      tpu.vector_store %arg5[%c0_90, %c0_91], %640 {strides = array<i32>} : memref<2x256xf32, #tpu.memory_space<vmem>>, vector<2x256xf32>,
    } else {
    }
    return
  }
  func.func @transform_0(%arg0: i32, %arg1: i32) -> i32 {
    %c0_i32 = arith.constant 0 : i32
    %c0_i32_0 = arith.constant 0 : i32
    return %c0_i32 : i32
  }
  func.func @transform_1(%arg0: i32, %arg1: i32) -> (i32, i32) {
    %c0_i32 = arith.constant 0 : i32
    %c0_i32_0 = arith.constant 0 : i32
    %c0_i32_1 = arith.constant 0 : i32
    return %c0_i32, %c0_i32_0 : i32, i32
  }
  func.func @transform_2(%arg0: i32, %arg1: i32) -> (i32, i32, i32) {
    %c0_i32 = arith.constant 0 : i32
    %c0_i32_0 = arith.constant 0 : i32
    return %arg0, %arg1, %c0_i32 : i32, i32, i32
  }
  func.func @transform_3(%arg0: i32, %arg1: i32) -> (i32, i32) {
    %c0_i32 = arith.constant 0 : i32
    %c0_i32_0 = arith.constant 0 : i32
    return %arg0, %c0_i32 : i32, i32
  }
}

</mosaic_0001>

<bundles_post_ra>
// kernel: tpu_custom_call.1
= control target key start
LH: loop header
LB: loop body
LE: loop exit
PB: predicated region body
PF: predicated region fallthrough
CT: control target
= control target key end

     0   :  { %8 = vsyncpa [#allocation7], 0  ;;  %s2968_s0 = inlined_call_operand.hbm [shape: f32[98], index: 0, kind: input, shape index: {}]   ;;  %s2969_s1 = inlined_call_operand.hbm [shape: s32[2,256], index: 1, kind: input, shape index: {}]   ;;  %s2970_s2 = inlined_call_operand.hbm [shape: f32[2,4,256], index: 2, kind: input, shape index: {}]   ;;  %s2971_s3 = inlined_call_operand.hbm [shape: f32[2,256], index: 3, kind: output, shape index: {}]  }
   0x1   :  { %9 = vsyncpa [#allocation5], 0 }
   0x2   :  { %10 = vsyncpa [#allocation10], 0 }
   0x3   :  { %11 = vsyncpa [#allocation6], 0  ;;  %s17_s14 = sshll.u32 %s2968_s0, 4  ;;  %s26_s17 = sshll.u32 %s2969_s1, 4  ;;  %s18_s14 = int_to_ptr.hbm [resolvable:$true] %s17_s14  ;;  %s27_s17 = int_to_ptr.hbm [resolvable:$true] %s26_s17 }
   0x4   :  { %s1731_s18 = smov [#allocation4]   ;;  %s1732_s19 = smov [#allocation8]  }
   0x5   :  { %20 = dma.hbm_to_smem %s18_s14, 16, %s1731_s18, [#allocation7]  }
   0x6   :  { %s28_s20 = sshll.u32 %s1732_s19, 4  ;;  %s36_s23 = sshll.u32 %s2970_s2, 4  ;;  %s29_s20 = int_to_ptr.vmem [resolvable:$true] %s28_s20  ;;  %s37_s23 = int_to_ptr.hbm [resolvable:$true] %s36_s23 }
   0x7   :  { %31 = dma.hbm_to_vmem [thread:$0]  %s27_s17, 64, %s29_s20, [#allocation5]  }
   0x8   :  { %s1733_s24 = smov [#allocation9]   ;;  %s1734_s0 = smov 128  }
   0x9   :  { %s38_s25 = sshll.u32 %s1733_s24, 4  ;;  %s1735_s26 = smov 8   ;;  %s39_s25 = int_to_ptr.vmem [resolvable:$true] %s38_s25 }
   0xa   :  { %44 = dma.hbm_to_vmem [thread:$0]  %s37_s23, 256, %s39_s25, [#allocation10], %s1734_s0, %s1734_s0, %s1735_s26  }
   0xb   :  { %1723 = dma.done.wait [#allocation7], 16  }
   0xc   :  { %1724 = vsyncadd [#allocation7], 4294967280 }
   0xd   :  { %1725 = dma.done.wait [#allocation5], 64  }
   0xe   :  { %1726 = vsyncadd [#allocation5], 4294967232 }
   0xf   :  { %1727 = dma.done.wait [#allocation10], 256  }
  0x10   :  { %1728 = vsyncadd [#allocation10], 4294967040 }
  0x11   :  { %57 = sfence }
  0x12   :  { %v58_v0 = vld [vmem:[#allocation9] ss:$4 sm:$0x3]  ;;  %v60_v1 = vld [vmem:[#allocation9 + $0x8] ss:$4 sm:$0x3] }
  0x13   :  { %v62_v2 = vld [vmem:[#allocation9 + $0x1] ss:$4 sm:$0x3]  ;;  %v64_v3 = vld [vmem:[#allocation9 + $0x9] ss:$4 sm:$0x3] }
  0x14   :  { %v65_v4 = vadd.f32 %v62_v2, %v58_v0  ;;  %v66_v5 = vadd.f32 %v64_v3, %v60_v1  ;;  %v70_v6 = vld [vmem:[#allocation9 + $0x2] ss:$4 sm:$0x3]  ;;  %v72_v7 = vld [vmem:[#allocation9 + $0xa] ss:$4 sm:$0x3]  ;;  %v67_v12 = vmax.f32 %v58_v0, %v62_v2  ;;  %v68_v15 = vmax.f32 %v60_v1, %v64_v3 }
  0x15   :  { %v78_v8 = vld [vmem:[#allocation9 + $0x3] ss:$4 sm:$0x3]  ;;  %v80_v9 = vld [vmem:[#allocation9 + $0xb] ss:$4 sm:$0x3] }
  0x16   :  { %v73_v10 = vadd.f32 %v70_v6, %v65_v4  ;;  %v74_v11 = vadd.f32 %v72_v7, %v66_v5  ;;  %v75_v16 = vmax.f32 %v67_v12, %v70_v6  ;;  %v76_v17 = vmax.f32 %v68_v15, %v72_v7  ;;  %s166_s1 = sld [smem:[#allocation4]]  ;;  %s1736_s6 = smov 51  }
  0x17   :  { %s1477_s2 = sld [smem:[#allocation4 + $0x31]]  ;;  %s1737_s9 = smov 50  }
  0x18   :  { %v81_v13 = vadd.f32 %v78_v8, %v73_v10  ;;  %v82_v14 = vadd.f32 %v80_v9, %v74_v11  ;;  %v83_v18 = vmax.f32 %v75_v16, %v78_v8  ;;  %v84_v19 = vmax.f32 %v76_v17, %v80_v9  ;;  %s1478_s27 = sld [smem:[#allocation4 + $0x1]]  ;;  %s1738_s12 = smov 49  }
  0x19   :  { %s1479_s28 = sld [smem:[#allocation4 + $0x32]]  ;;  %s1739_s15 = smov 48  }
  0x1a   :  { %91 = vst [vmem:[#allocation1] ss:$2 sm:$0xff] %v81_v13  ;;  %s1480_s29 = sld [smem:[#allocation4 + $0x2]]  ;;  %s1740_s18 = smov 47  }
  0x1b   :  { %93 = vst [vmem:[#allocation1 + $0x1] ss:$2 sm:$0xff] %v82_v14  ;;  %s1481_s30 = sld [smem:[#allocation4 + $0x33]]  ;;  %s1741_s21 = smov 46  }
  0x1c   :  { %v168_v24 = vstv %s166_s1  ;;  %s1482_s4 = sld [smem:[#allocation4 + $0x3]]  ;;  %s1742_s24 = smov 45  }
  0x1d   :  { %v170_v25 = vstv %s1477_s2  ;;  %s1483_s5 = sld [smem:[#allocation4 + $0x34]]  ;;  %s1743_s26 = smov 35  }
  0x1e   :  { %v196_v29 = vstv %s1478_s27  ;;  %s1484_s7 = sld [smem:[#allocation4 + $0x4]]  ;;  %s1744_s27 = smov 34  }
  0x1f   :  { %v198_v30 = vstv %s1479_s28  ;;  %s1485_s8 = sld [smem:[#allocation4 + $0x35]] }
  0x20   :  { %v222_v35 = vstv %s1480_s29  ;;  %s1486_s10 = sld [smem:[#allocation4 + $0x5]] }
  0x21   :  { %v224_v36 = vstv %s1481_s30  ;;  %s1487_s11 = sld [smem:[#allocation4 + $0x36]]  ;;  %s1745_s30 = smov 33  }
  0x22   :  { %v94_v20 = vld [vmem:[#allocation1] sm:$0xff]  ;;  %v248_v42 = vstv %s1482_s4  ;;  %s1488_s13 = sld [smem:[#allocation4 + $0x6]] }
  0x23   :  { %96 = vst [vmem:[#allocation2] sm:$0xf] %v94_v20  ;;  %v250_v43 = vstv %s1483_s5  ;;  %s1489_s14 = sld [smem:[#allocation4 + $0x37]] }
  0x24   :  { %99 = vst [vmem:[#allocation1] ss:$2 sm:$0xff] %v83_v18  ;;  %v272_v49 = vstv %s1484_s7  ;;  %s1490_s16 = sld [smem:[#allocation4 + $0x7]] }
  0x25   :  { %101 = vst [vmem:[#allocation1 + $0x1] ss:$2 sm:$0xff] %v84_v19  ;;  %v274_v50 = vstv %s1485_s8  ;;  %s1491_s17 = sld [smem:[#allocation4 + $0x38]] }
  0x26   :  { %v298_v56 = vstv %s1486_s10  ;;  %s1492_s19 = sld [smem:[#allocation4 + $0x8]] }
  0x27   :  { %v300_v57 = vstv %s1487_s11  ;;  %s1493_s20 = sld [smem:[#allocation4 + $0x39]] }
  0x28   :  { %v324_v63 = vstv %s1488_s13  ;;  %s1494_s22 = sld [smem:[#allocation4 + $0x9]] }
  0x29   :  { %v326_v0 = vstv %s1489_s14  ;;  %s1495_s23 = sld [smem:[#allocation4 + $0x3a]] }
  0x2a   :  { %v132_v22 = vld [vmem:[#allocation2] sm:$0xf]  ;;  %v350_v6 = vstv %s1490_s16  ;;  %s1496_s25 = sld [smem:[#allocation4 + $0xa]] }
  0x2b   :  { %v1814_v23 = vmul.f32 0.25, %v132_v22  ;;  %v352_v7 = vstv %s1491_s17  ;;  %s1497_s0 = sld [smem:[#allocation4 + $0x3b]] }
  0x2c   :  { %v102_v21 = vld [vmem:[#allocation1] sm:$0xff]  ;;  %v376_v13 = vstv %s1492_s19  ;;  %s1498_s1 = sld [smem:[#allocation4 + $0xb]] }
  0x2d   :  { %104 = vst [vmem:[#allocation3] sm:$0xf] %v102_v21  ;;  %v169_v26 = vmul.f32 %v168_v24, %v1814_v23  ;;  %v197_v32 = vmul.f32 %v196_v29, %v1814_v23  ;;  %v223_v39 = vmul.f32 %v222_v35, %v1814_v23  ;;  %v249_v46 = vmul.f32 %v248_v42, %v1814_v23  ;;  %s1499_s2 = sld [smem:[#allocation4 + $0x3c]] }
  0x2e   :  { %v273_v53 = vmul.f32 %v272_v49, %v1814_v23  ;;  %v299_v60 = vmul.f32 %v298_v56, %v1814_v23  ;;  %v325_v3 = vmul.f32 %v324_v63, %v1814_v23  ;;  %v351_v10 = vmul.f32 %v350_v6, %v1814_v23  ;;  %s1500_s28 = sld [smem:[#allocation4 + $0xc]] }
  0x2f   :  { %v378_v14 = vstv %s1493_s20  ;;  %v377_v17 = vmul.f32 %v376_v13, %v1814_v23  ;;  %v402_v20 = vstv %s1494_s22  ;;  %v404_v21 = vstv %s1495_s23  ;;  %s1501_s29 = sld [smem:[#allocation4 + $0x3d]] }
  0x30   :  { %v428_v29 = vstv %s1496_s25  ;;  %s1502_s4 = sld [smem:[#allocation4 + $0xd]] }
  0x31   :  { %s1503_s5 = sld [smem:[#allocation4 + $0x3e]] }
  0x32   :  { %s1504_s7 = sld [smem:[#allocation4 + $0xe]] }
  0x33   :  { %s1505_s8 = sld [smem:[#allocation4 + $0x3f]] }
  0x34   :  { %v1817_v27 = vld [vmem:[#allocation3] sm:$0xf]  ;;  %s1506_s10 = sld [smem:[#allocation4 + $0xf]] }
  0x35   :  { %v171_v28 = vmul.f32 %v170_v25, %v1817_v27  ;;  %v199_v33 = vmul.f32 %v198_v30, %v1817_v27  ;;  %v225_v40 = vmul.f32 %v224_v36, %v1817_v27  ;;  %v251_v47 = vmul.f32 %v250_v43, %v1817_v27  ;;  %s1507_s11 = sld [smem:[#allocation4 + $0x40]] }
  0x36   :  { %v275_v54 = vmul.f32 %v274_v50, %v1817_v27  ;;  %v301_v61 = vmul.f32 %v300_v57, %v1817_v27  ;;  %v327_v4 = vmul.f32 %v326_v0, %v1817_v27  ;;  %v353_v11 = vmul.f32 %v352_v7, %v1817_v27  ;;  %s1508_s13 = sld [smem:[#allocation4 + $0x10]] }
  0x37   :  { %v172_v31 = vadd.f32 %v171_v28, %v169_v26  ;;  %v200_v34 = vadd.f32 %v199_v33, %v197_v32  ;;  %v226_v41 = vadd.f32 %v225_v40, %v223_v39  ;;  %v252_v48 = vadd.f32 %v251_v47, %v249_v46  ;;  %s1509_s14 = sld [smem:[#allocation4 + $0x41]] }
  0x38   :  { %v276_v55 = vadd.f32 %v275_v54, %v273_v53  ;;  %v302_v62 = vadd.f32 %v301_v61, %v299_v60  ;;  %v328_v5 = vadd.f32 %v327_v4, %v325_v3  ;;  %v354_v12 = vadd.f32 %v353_v11, %v351_v10  ;;  %s1510_s16 = sld [smem:[#allocation4 + $0x11]] }
  0x39   :  { %174 = vst [vmem:[#allocation1] ss:$4 sm:$0xff] %v172_v31  ;;  %v379_v18 = vmul.f32 %v378_v14, %v1817_v27  ;;  %v403_v25 = vmul.f32 %v402_v20, %v1814_v23  ;;  %v405_v26 = vmul.f32 %v404_v21, %v1817_v27  ;;  %v430_v30 = vstv %s1497_s0  ;;  %s1511_s17 = sld [smem:[#allocation4 + $0x42]] }
  0x3a   :  { %v429_v33 = vmul.f32 %v428_v29, %v1814_v23  ;;  %v452_v36 = vstv %s1498_s1  ;;  %v478_v43 = vstv %s1500_s28  ;;  %v504_v50 = vstv %s1502_s4  ;;  %s1512_s19 = sld [smem:[#allocation4 + $0x12]]  ;;  %s1755_s4 = smov 14  }
  0x3b   :  { %v380_v19 = vadd.f32 %v379_v18, %v377_v17  ;;  %v406_v28 = vadd.f32 %v405_v26, %v403_v25  ;;  %v453_v40 = vmul.f32 %v452_v36, %v1814_v23  ;;  %v479_v47 = vmul.f32 %v478_v43, %v1814_v23  ;;  %s1513_s20 = sld [smem:[#allocation4 + $0x43]] }
  0x3c   :  { %v505_v54 = vmul.f32 %v504_v50, %v1814_v23  ;;  %v530_v57 = vstv %s1504_s7  ;;  %v556_v0 = vstv %s1506_s10  ;;  %v582_v7 = vstv %s1508_s13  ;;  %s1514_s22 = sld [smem:[#allocation4 + $0x13]] }
  0x3d   :  { %v531_v61 = vmul.f32 %v530_v57, %v1814_v23  ;;  %v557_v4 = vmul.f32 %v556_v0, %v1814_v23  ;;  %v583_v11 = vmul.f32 %v582_v7, %v1814_v23  ;;  %s1515_s23 = sld [smem:[#allocation4 + $0x44]] }
  0x3e   :  { %v608_v14 = vstv %s1510_s16  ;;  %s1856_s25 = sld [smem:[#allocation4 + $0x14]] }
  0x3f   :  { %v609_v18 = vmul.f32 %v608_v14, %v1814_v23  ;;  %s1858_s0 = sld [smem:[#allocation4 + $0x45]] }
  0x40   :  { %v175_v37 = vld.sshfl [vmem:[#allocation1] sm:$0xff pattern:$0x73625140]  ;;  %v176_v38 = vld.sshfl [vmem:[#allocation1 + $0x8] sm:$0xff pattern:$0x73625140]  ;;  %v632_v21 = vstv %s1512_s19 }
  0x41   :  { %179 = vrot.lane.b32.xlu0 %v175_v37, %s1736_s6  ;;  %202 = vst [vmem:[#allocation1] ss:$4 sm:$0xff] %v200_v34  ;;  %v431_v34 = vmul.f32 %v430_v30, %v1817_v27  ;;  %v454_v37 = vstv %s1499_s2  ;;  %v633_v26 = vmul.f32 %v632_v21, %v1814_v23  ;;  %s1864_s1 = sld [smem:[#allocation4 + $0x15]] }
  0x42   :  { %s1868_s2 = sld [smem:[#allocation4 + $0x46]] }
  0x43   :  { %v432_v35 = vadd.f32 %v431_v34, %v429_v33  ;;  %v658_v33 = vstv %s1514_s22  ;;  %v660_v34 = vstv %s1515_s23  ;;  %s1882_s28 = sld [smem:[#allocation4 + $0x47]]  ;;  %s1761_s23 = smov 126  }
  0x44   :  { %s2011_s7 = sld [smem:[#allocation4 + $0x18]] }
  0x45   :  { %s2060_s10 = sld [smem:[#allocation4 + $0x19]] }
  0x46   :  { %s2081_s13 = sld [smem:[#allocation4 + $0x1a]] }
  0x47   :  { %s2102_s16 = sld [smem:[#allocation4 + $0x1b]] }
  0x48   :  { %v203_v44 = vld.sshfl [vmem:[#allocation1] sm:$0xff pattern:$0x73625140]  ;;  %v204_v45 = vld.sshfl [vmem:[#allocation1 + $0x8] sm:$0xff pattern:$0x73625140] }
  0x49   :  { %207 = vrot.lane.b32.xlu1 %v203_v44, %s1737_s9  ;;  %181 = vrot.lane.b32.xlu0 %v176_v38, %s1736_s6  ;;  %228 = vst [vmem:[#allocation1] ss:$4 sm:$0xff] %v226_v41  ;;  %v455_v41 = vmul.f32 %v454_v37, %v1817_v27  ;;  %v480_v44 = vstv %s1501_s29  ;;  %s1746_s6 = smov 32   ;;  %v659_v37 = vmul.f32 %v658_v33, %v1814_v23  ;;  %s1754_s29 = smov 15   ;;  %v736_v14 = vstv %s1882_s28 }
  0x4a   :  { %v737_v21 = vmul.f32 %v736_v14, %v1817_v27  ;;  %v782_v14 = vstv %s2011_s7  ;;  %s2131_s19 = sld [smem:[#allocation4 + $0x4d]] }
  0x4b   :  { %v456_v42 = vadd.f32 %v455_v41, %v453_v40  ;;  %s2154_s22 = sld [smem:[#allocation4 + $0x4e]] }
  0x4c   :  { %s2227_s28 = sld [smem:[#allocation4 + $0x51]] }
  0x4d   :  { %s2273_s7 = sld [smem:[#allocation4 + $0x53]] }
  0x50   :  { %v229_v51 = vld.sshfl [vmem:[#allocation1] sm:$0xff pattern:$0x73625140]  ;;  %v230_v52 = vld.sshfl [vmem:[#allocation1 + $0x8] sm:$0xff pattern:$0x73625140] }
  0x51   :  { %209 = vrot.lane.b32.xlu1 %v204_v45, %s1737_s9  ;;  %254 = vst [vmem:[#allocation1] ss:$4 sm:$0xff] %v252_v48  ;;  %233 = vrot.lane.b32.xlu2 %v229_v51, %s1738_s12  ;;  %v481_v48 = vmul.f32 %v480_v44, %v1817_v27  ;;  %v506_v51 = vstv %s1503_s5  ;;  %s1747_s9 = smov 31   ;;  %s1965_s5 = sld [smem:[#allocation4 + $0x48]] }
  0x53   :  { %v482_v49 = vadd.f32 %v481_v48, %v479_v47  ;;  %v135_v47 = vld [vmem:[#allocation8] ss:$2 sm:$0x3]  ;;  %v139_v48 = vld [vmem:[#allocation8 + $0x1] ss:$2 sm:$0x3] }
  0x54   :  { %v1886_v57 = vperm.slane %v135_v47, 0 }
  0x56   :  { %vm142_vm4 = vcmp.ge.s32.totalorder %v1886_v57, 3 }
  0x58   :  { %v256_v58 = vld.sshfl [vmem:[#allocation1 + $0x8] sm:$0xff pattern:$0x73625140]  ;;  %v255_v59 = vld.sshfl [vmem:[#allocation1] sm:$0xff pattern:$0x73625140] }
  0x59   :  { %261 = vrot.lane.b32.xlu1 %v256_v58, %s1739_s15  ;;  %259 = vrot.lane.b32.xlu0 %v255_v59, %s1739_s15  ;;  %278 = vst [vmem:[#allocation1] ss:$4 sm:$0xff] %v276_v55  ;;  %v507_v55 = vmul.f32 %v506_v51, %v1817_v27  ;;  %v532_v58 = vstv %s1505_s8  ;;  %s1749_s15 = smov 29   ;;  %s2020_s8 = sld [smem:[#allocation4 + $0x49]] }
  0x5a   :  { %235 = vrot.lane.b32.xlu2 %v230_v52, %s1738_s12  ;;  %s1748_s12 = smov 30  }
  0x5b   :  { %v508_v56 = vadd.f32 %v507_v55, %v505_v54 }
  0x60   :  { %v280_v1 = vld.sshfl [vmem:[#allocation1 + $0x8] sm:$0xff pattern:$0x73625140]  ;;  %v279_v2 = vld.sshfl [vmem:[#allocation1] sm:$0xff pattern:$0x73625140] }
  0x61   :  { %285 = vrot.lane.b32.xlu0 %v280_v1, %s1740_s18  ;;  %304 = vst [vmem:[#allocation1] ss:$4 sm:$0xff] %v302_v62  ;;  %v533_v62 = vmul.f32 %v532_v58, %v1817_v27  ;;  %v558_v1 = vstv %s1507_s11  ;;  %v1888_v58 = vperm.slane %v135_v47, 1  ;;  %s2064_s11 = sld [smem:[#allocation4 + $0x4a]] }
  0x62   :  { %283 = vrot.lane.b32.xlu2 %v279_v2, %s1740_s18  ;;  %s1750_s18 = smov 19  }
  0x63   :  { %v534_v63 = vadd.f32 %v533_v62, %v531_v61  ;;  %v1893_v62 = vperm.slane %v139_v48, 1  ;;  %vm143_vm6 = vcmp.ge.s32.totalorder %v1888_v58, 3 }
  0x65   :  { %vm155_vm7 = vcmp.ge.s32.totalorder %v1893_v62, 3  ;;  %vm2978_vm9 = vcmp.ge.s32.totalorder %v1893_v62, 2 }
  0x66   :  { %vm1928_vm11 = vmand %vm143_vm6, %vm155_vm7 }
  0x67   :  { %vm1947_vm14 = vmand %vm143_vm6, %vm2978_vm9 }
  0x68   :  { %v305_v8 = vld.sshfl [vmem:[#allocation1] sm:$0xff pattern:$0x73625140]  ;;  %v306_v9 = vld.sshfl [vmem:[#allocation1 + $0x8] sm:$0xff pattern:$0x73625140] }
  0x69   :  { %309 = vrot.lane.b32.xlu1 %v305_v8, %s1741_s21  ;;  %330 = vst [vmem:[#allocation1] ss:$4 sm:$0xff] %v328_v5  ;;  %v559_v5 = vmul.f32 %v558_v1, %v1817_v27  ;;  %v584_v8 = vstv %s1509_s14  ;;  %s1529_s14 = sld [smem:[#allocation4 + $0x4b]] }
  0x6a   :  { %311 = vrot.lane.b32.xlu2 %v306_v9, %s1741_s21  ;;  %s1751_s21 = smov 18  }
  0x6b   :  { %v560_v6 = vadd.f32 %v559_v5, %v557_v4  ;;  %v710_v4 = vstv %s1864_s1  ;;  %v712_v5 = vstv %s1868_s2  ;;  %s2203_s1 = sld [smem:[#allocation4 + $0x50]]  ;;  %s1763_s2 = smov 115  }
  0x70   :  { %v332_v15 = vld.sshfl [vmem:[#allocation1 + $0x8] sm:$0xff pattern:$0x73625140]  ;;  %v331_v16 = vld.sshfl [vmem:[#allocation1] sm:$0xff pattern:$0x73625140] }
  0x71   :  { %337 = vrot.lane.b32.xlu1 %v332_v15, %s1742_s24  ;;  %335 = vrot.lane.b32.xlu0 %v331_v16, %s1742_s24  ;;  %356 = vst [vmem:[#allocation1] ss:$4 sm:$0xff] %v354_v12  ;;  %v585_v12 = vmul.f32 %v584_v8, %v1817_v27  ;;  %v610_v15 = vstv %s1511_s17  ;;  %s1752_s24 = smov 17   ;;  %s1531_s17 = sld [smem:[#allocation4 + $0x4c]] }
  0x73   :  { %v586_v13 = vadd.f32 %v585_v12, %v583_v11  ;;  %v713_v11 = vmul.f32 %v712_v5, %v1817_v27 }
  0x78   :  { %v358_v22 = vld.sshfl [vmem:[#allocation1 + $0x8] sm:$0xff pattern:$0x73625140]  ;;  %v357_v24 = vld.sshfl [vmem:[#allocation1] sm:$0xff pattern:$0x73625140] }
  0x79   :  { %363 = vrot.lane.b32.xlu0 %v358_v22, %s1743_s26  ;;  %382 = vst [vmem:[#allocation1] ss:$4 sm:$0xff] %v380_v19  ;;  %361 = vrot.lane.b32.xlu2 %v357_v24, %s1743_s26  ;;  %v611_v19 = vmul.f32 %v610_v15, %v1817_v27  ;;  %v634_v22 = vstv %s1513_s20  ;;  %s1753_s26 = smov 16   ;;  %v784_v15 = vstv %s2020_s8  ;;  %s1760_s20 = smov 127  }
  0x7a   :  { %s1766_s8 = smov 112  }
  0x7b   :  { %v612_v20 = vadd.f32 %v611_v19, %v609_v18  ;;  %v785_v19 = vmul.f32 %v784_v15, %v1817_v27 }
  0x80   :  { %v383_v31 = vld.sshfl [vmem:[#allocation1] sm:$0xff pattern:$0x73625140]  ;;  %v384_v32 = vld.sshfl [vmem:[#allocation1 + $0x8] sm:$0xff pattern:$0x73625140] }
  0x81   :  { %387 = vrot.lane.b32.xlu1 %v383_v31, %s1744_s27  ;;  %408 = vst [vmem:[#allocation1] ss:$4 sm:$0xff] %v406_v28  ;;  %389 = vrot.lane.b32.xlu2 %v384_v32, %s1744_s27  ;;  %v635_v28 = vmul.f32 %v634_v22, %v1817_v27  ;;  %s1876_s27 = sld [smem:[#allocation4 + $0x16]] }
  0x83   :  { %v636_v32 = vadd.f32 %v635_v28, %v633_v26 }
  0x88   :  { %v410_v38 = vld.sshfl [vmem:[#allocation1 + $0x8] sm:$0xff pattern:$0x73625140]  ;;  %v409_v39 = vld.sshfl [vmem:[#allocation1] sm:$0xff pattern:$0x73625140] }
  0x89   :  { %415 = vrot.lane.b32.xlu1 %v410_v38, %s1745_s30  ;;  %413 = vrot.lane.b32.xlu0 %v409_v39, %s1745_s30  ;;  %434 = vst [vmem:[#allocation1] ss:$4 sm:$0xff] %v432_v35  ;;  %v661_v38 = vmul.f32 %v660_v34, %v1817_v27  ;;  %v183_v39 = vlaneseq  ;;  %s1912_s30 = sld [smem:[#allocation4 + $0x17]] }
  0x8b   :  { %v662_v44 = vadd.f32 %v661_v38, %v659_v37 }
  0x8f   :  { %v758_v33 = vstv %s1912_s30  ;;  %s2240_s30 = sld [smem:[#allocation4 + $0x21]] }
  0x90   :  { %v436_v45 = vld.sshfl [vmem:[#allocation1 + $0x8] sm:$0xff pattern:$0x73625140]  ;;  %v435_v46 = vld.sshfl [vmem:[#allocation1] sm:$0xff pattern:$0x73625140] }
  0x91   :  { %441 = vrot.lane.b32.xlu0 %v436_v45, %s1746_s6  ;;  %458 = vst [vmem:[#allocation1] ss:$4 sm:$0xff] %v456_v42  ;;  %439 = vrot.lane.b32.xlu2 %v435_v46, %s1746_s6  ;;  %v1862_v42 = vand.u32 127, %v183_v39  ;;  %v684_v45 = vstv %s1856_s25  ;;  %v686_v46 = vstv %s1858_s0  ;;  %s1756_s6 = smov 13   ;;  %s2177_s25 = sld [smem:[#allocation4 + $0x4f]] }
  0x92   :  { %v685_v55 = vmul.f32 %v684_v45, %v1814_v23  ;;  %s1762_s0 = smov 125  }
  0x93   :  { %vm185_vm0 = vcmp.lt.s32.totalorder %v1862_v42, 51  ;;  %vm211_vm1 = vcmp.lt.s32.totalorder %v1862_v42, 50  ;;  %vm237_vm2 = vcmp.lt.s32.totalorder %v1862_v42, 49  ;;  %vm263_vm3 = vcmp.lt.s32.totalorder %v1862_v42, 48 }
  0x98   :  { %v459_v52 = vld.sshfl [vmem:[#allocation1] sm:$0xff pattern:$0x73625140]  ;;  %v460_v53 = vld.sshfl [vmem:[#allocation1 + $0x8] sm:$0xff pattern:$0x73625140] }
  0x99   :  { %463 = vrot.lane.b32.xlu1 %v459_v52, %s1747_s9  ;;  %484 = vst [vmem:[#allocation1] ss:$4 sm:$0xff] %v482_v49  ;;  %465 = vrot.lane.b32.xlu2 %v460_v53, %s1747_s9  ;;  %s1757_s9 = smov 3  }
  0xa0   :  { %v486_v59 = vld.sshfl [vmem:[#allocation1 + $0x8] sm:$0xff pattern:$0x73625140]  ;;  %v485_v60 = vld.sshfl [vmem:[#allocation1] sm:$0xff pattern:$0x73625140] }
  0xa1   :  { %491 = vrot.lane.b32.xlu1 %v486_v59, %s1748_s12  ;;  %489 = vrot.lane.b32.xlu0 %v485_v60, %s1748_s12  ;;  %510 = vst [vmem:[#allocation1] ss:$4 sm:$0xff] %v508_v56  ;;  %v687_v56 = vmul.f32 %v686_v46, %v1817_v27  ;;  %v1890_v59 = vperm.slane %v139_v48, 0  ;;  %s1758_s12 = smov 2  }
  0xa3   :  { %vm154_vm5 = vcmp.ge.s32.totalorder %v1890_v59, 3  ;;  %vm2979_vm8 = vcmp.ge.s32.totalorder %v1890_v59, 2  ;;  %vm2973_vm12 = vcmp.ge.s32.totalorder %v1890_v59, 1 }
  0xa4   :  { %vm1919_vm10 = vmand %vm142_vm4, %vm154_vm5 }
  0xa5   :  { %vm1939_vm13 = vmand %vm142_vm4, %vm2979_vm8 }
  0xa6   :  { %vm1955_vm15 = vmand %vm142_vm4, %vm2973_vm12  ;;  %vm2977_vm12 = vcmp.lt.s32.totalorder %v1890_v59, 13 }
  0xa8   :  { %v512_v2 = vld.sshfl [vmem:[#allocation1 + $0x8] sm:$0xff pattern:$0x73625140]  ;;  %v511_v3 = vld.sshfl [vmem:[#allocation1] sm:$0xff pattern:$0x73625140] }
  0xa9   :  { %517 = vrot.lane.b32.xlu0 %v512_v2, %s1749_s15  ;;  %536 = vst [vmem:[#allocation1] ss:$4 sm:$0xff] %v534_v63  ;;  %515 = vrot.lane.b32.xlu2 %v511_v3, %s1749_s15  ;;  %v688_v3 = vadd.f32 %v687_v56, %v685_v55  ;;  %s1759_s15 = smov 1  }
  0xab   :  { %v234_v31 = vpop.permute.xlu2 %233 }
  0xb0   :  { %v537_v9 = vld.sshfl [vmem:[#allocation1] sm:$0xff pattern:$0x73625140]  ;;  %v538_v10 = vld.sshfl [vmem:[#allocation1 + $0x8] sm:$0xff pattern:$0x73625140] }
  0xb1   :  { %541 = vrot.lane.b32.xlu1 %v537_v9, %s1750_s18  ;;  %562 = vst [vmem:[#allocation1] ss:$4 sm:$0xff] %v560_v6  ;;  %543 = vrot.lane.b32.xlu2 %v538_v10, %s1750_s18  ;;  %v711_v9 = vmul.f32 %v710_v4, %v1814_v23  ;;  %s2122_s18 = sld [smem:[#allocation4 + $0x1c]] }
  0xb3   :  { %v180_v29 = vpop.permute.xlu0 %179  ;;  %v714_v22 = vadd.f32 %v713_v11, %v711_v9 }
  0xb4   :  { %v236_v43 = vpop.permute.xlu2 %235 }
  0xb5   :  { %v1895_v63 = vsel %vm237_vm2, %v234_v31, %v236_v43  ;;  %v1897_v0 = vsel %vm237_vm2, %v236_v43, %v234_v31  ;;  %vm2974_vm2 = vcmp.lt.s32.totalorder %v1890_v59, 15 }
  0xb8   :  { %v564_v16 = vld.sshfl [vmem:[#allocation1 + $0x8] sm:$0xff pattern:$0x73625140]  ;;  %v563_v17 = vld.sshfl [vmem:[#allocation1] sm:$0xff pattern:$0x73625140] }
  0xb9   :  { %569 = vrot.lane.b32.xlu1 %v564_v16, %s1751_s21  ;;  %567 = vrot.lane.b32.xlu0 %v563_v17, %s1751_s21  ;;  %588 = vst [vmem:[#allocation1] ss:$4 sm:$0xff] %v586_v13  ;;  %v734_v13 = vstv %s1876_s27  ;;  %s2144_s21 = sld [smem:[#allocation4 + $0x1d]] }
  0xba   :  { %s2217_s27 = sld [smem:[#allocation4 + $0x20]] }
  0xbb   :  { %v208_v30 = vpop.permute.xlu1 %207  ;;  %v182_v40 = vpop.permute.xlu0 %181 }
  0xbc   :  { %v1871_v49 = vsel %vm185_vm0, %v180_v29, %v182_v40  ;;  %v1873_v50 = vsel %vm185_vm0, %v182_v40, %v180_v29  ;;  %v284_v6 = vpop.permute.xlu2 %283  ;;  %vm2972_vm0 = vcmp.ge.s32.totalorder %v1893_v62, 1  ;;  %v242_v29 = vsel %vm1955_vm15, %v1897_v0, 0.0 }
  0xbd   :  { %vm313_vm15 = vcmp.lt.s32.totalorder %v1862_v42, 46 }
  0xc0   :  { %v590_v24 = vld.sshfl [vmem:[#allocation1 + $0x8] sm:$0xff pattern:$0x73625140]  ;;  %v589_v25 = vld.sshfl [vmem:[#allocation1] sm:$0xff pattern:$0x73625140] }
  0xc1   :  { %595 = vrot.lane.b32.xlu0 %v590_v24, %s1752_s24  ;;  %614 = vst [vmem:[#allocation1] ss:$4 sm:$0xff] %v612_v20  ;;  %593 = vrot.lane.b32.xlu2 %v589_v25, %s1752_s24  ;;  %v735_v20 = vmul.f32 %v734_v13, %v1814_v23  ;;  %v190_v24 = vsel %vm1919_vm10, %v1873_v50, 0.0  ;;  %v191_v25 = vsel %vm1928_vm11, %v1871_v49, 0.0  ;;  %vm287_vm10 = vcmp.lt.s32.totalorder %v1862_v42, 47  ;;  %s2167_s24 = sld [smem:[#allocation4 + $0x1e]] }
  0xc2   :  { %vm162_vm11 = vcmp.lt.s32.totalorder %v1890_v59, 14  ;;  %v760_v50 = vstv %s1965_s5  ;;  %s1765_s5 = smov 113  }
  0xc3   :  { %v210_v41 = vpop.permute.xlu1 %209 }
  0xc4   :  { %v1878_v51 = vsel %vm211_vm1, %v208_v30, %v210_v41  ;;  %v1880_v52 = vsel %vm211_vm1, %v210_v41, %v208_v30  ;;  %v312_v34 = vpop.permute.xlu2 %311  ;;  %vm1984_vm1 = vmand %vm143_vm6, %vm2972_vm0 }
  0xc5   :  { %v216_v26 = vsel %vm1939_vm13, %v1880_v52, 0.0  ;;  %v217_v28 = vsel %vm1947_vm14, %v1878_v51, 0.0  ;;  %vm290_vm13 = vmand %vm142_vm4, %vm2974_vm2  ;;  %vm2982_vm14 = vcmp.lt.s32.totalorder %v1893_v62, 14  ;;  %vm2976_vm2 = vcmp.lt.s32.totalorder %v1893_v62, 13 }
  0xc8   :  { %v615_v35 = vld.sshfl [vmem:[#allocation1] sm:$0xff pattern:$0x73625140]  ;;  %v616_v36 = vld.sshfl [vmem:[#allocation1 + $0x8] sm:$0xff pattern:$0x73625140] }
  0xc9   :  { %619 = vrot.lane.b32.xlu1 %v615_v35, %s1753_s26  ;;  %638 = vst [vmem:[#allocation1] ss:$4 sm:$0xff] %v636_v32  ;;  %621 = vrot.lane.b32.xlu2 %v616_v36, %s1753_s26  ;;  %v738_v32 = vadd.f32 %v737_v21, %v735_v20  ;;  %s2193_s26 = sld [smem:[#allocation4 + $0x1f]] }
  0xcb   :  { %v262_v60 = vpop.permute.xlu1 %261  ;;  %v260_v61 = vpop.permute.xlu0 %259 }
  0xcc   :  { %v1900_v1 = vsel %vm263_vm3, %v260_v61, %v262_v60  ;;  %v1902_v2 = vsel %vm263_vm3, %v262_v60, %v260_v61  ;;  %vm2975_vm3 = vcmp.lt.s32.totalorder %v1893_v62, 15  ;;  %v759_v61 = vmul.f32 %v758_v33, %v1814_v23 }
  0xcd   :  { %vm291_vm0 = vmand %vm143_vm6, %vm2975_vm3  ;;  %vm339_vm3 = vcmp.lt.s32.totalorder %v1862_v42, 45 }
  0xd0   :  { %v640_v53 = vld.sshfl [vmem:[#allocation1 + $0x8] sm:$0xff pattern:$0x73625140]  ;;  %v639_v54 = vld.sshfl [vmem:[#allocation1] sm:$0xff pattern:$0x73625140] }
  0xd1   :  { %645 = vrot.lane.b32.xlu1 %v640_v53, %s1754_s29  ;;  %643 = vrot.lane.b32.xlu0 %v639_v54, %s1754_s29  ;;  %664 = vst [vmem:[#allocation1] ss:$4 sm:$0xff] %v662_v44  ;;  %v243_v53 = vsel %vm1984_vm1, %v1895_v63, 0.0  ;;  %v761_v63 = vmul.f32 %v760_v50, %v1817_v27  ;;  %vm144_vm1 = vcmp.ge.s32.totalorder %v1886_v57, 2  ;;  %s1764_s29 = smov 114  }
  0xd3   :  { %v286_v17 = vpop.permute.xlu0 %285  ;;  %v362_v4 = vpop.permute.xlu2 %361  ;;  %v762_v11 = vadd.f32 %v761_v63, %v759_v61 }
  0xd4   :  { %v288_v36 = vsel %vm287_vm10, %v284_v6, %v286_v17  ;;  %v289_v37 = vsel %vm287_vm10, %v286_v17, %v284_v6  ;;  %vm316_vm10 = vmand %vm142_vm4, %vm162_vm11  ;;  %v266_v6 = vsel %vm142_vm4, %v1902_v2, 0.0 }
  0xd5   :  { %v292_v38 = vsel %vm290_vm13, %v289_v37, 0.0  ;;  %v293_v43 = vsel %vm291_vm0, %v288_v36, 0.0  ;;  %vm317_vm0 = vmand %vm143_vm6, %vm2982_vm14 }
  0xd6   :  { %v2003_v44 = vadd.f32 %v292_v38, %v190_v24  ;;  %v2013_v46 = vadd.f32 %v293_v43, %v191_v25  ;;  %vm342_vm13 = vmand %vm142_vm4, %vm2977_vm12  ;;  %vm391_vm4 = vcmp.lt.s32.totalorder %v1862_v42, 34 }
  0xd8   :  { %v666_v7 = vld.sshfl [vmem:[#allocation1 + $0x8] sm:$0xff pattern:$0x73625140]  ;;  %v665_v8 = vld.sshfl [vmem:[#allocation1] sm:$0xff pattern:$0x73625140] }
  0xd9   :  { %671 = vrot.lane.b32.xlu0 %v666_v7, %s1755_s4  ;;  %690 = vst [vmem:[#allocation1] ss:$4 sm:$0xff] %v688_v3  ;;  %669 = vrot.lane.b32.xlu2 %v665_v8, %s1755_s4  ;;  %v267_v7 = vsel %vm143_vm6, %v1900_v1, 0.0  ;;  %s2250_s4 = sld [smem:[#allocation4 + $0x52]] }
  0xdb   :  { %v310_v18 = vpop.permute.xlu1 %309  ;;  %v390_v21 = vpop.permute.xlu2 %389 }
  0xdc   :  { %v314_v39 = vsel %vm313_vm15, %v310_v18, %v312_v34  ;;  %v315_v40 = vsel %vm313_vm15, %v312_v34, %v310_v18  ;;  %vm365_vm15 = vcmp.lt.s32.totalorder %v1862_v42, 35  ;;  %v783_v18 = vmul.f32 %v782_v14, %v1814_v23 }
  0xdd   :  { %v318_v47 = vsel %vm316_vm10, %v315_v40, 0.0  ;;  %v319_v51 = vsel %vm317_vm0, %v314_v39, 0.0  ;;  %vm145_vm10 = vcmp.ge.s32.totalorder %v1888_v58, 2  ;;  %vm368_vm0 = vmand %vm144_vm1, %vm154_vm5 }
  0xde   :  { %v2022_v52 = vadd.f32 %v318_v47, %v216_v26  ;;  %v2031_v54 = vadd.f32 %v319_v51, %v217_v28  ;;  %v786_v25 = vadd.f32 %v785_v19, %v783_v18  ;;  %v869_v19 = vstv %s2122_s18  ;;  %s2351_s18 = sld [smem:[#allocation4 + $0x26]] }
  0xe0   :  { %v691_v30 = vld.sshfl [vmem:[#allocation1] sm:$0xff pattern:$0x73625140]  ;;  %v692_v31 = vld.sshfl [vmem:[#allocation1 + $0x8] sm:$0xff pattern:$0x73625140] }
  0xe1   :  { %695 = vrot.lane.b32.xlu1 %v691_v30, %s1756_s6  ;;  %716 = vst [vmem:[#allocation1] ss:$4 sm:$0xff] %v714_v22  ;;  %697 = vrot.lane.b32.xlu2 %v692_v31, %s1756_s6  ;;  %v799_v30 = vstv %s2064_s11  ;;  %s2263_s6 = sld [smem:[#allocation4 + $0x22]]  ;;  %s1767_s11 = smov 111  }
  0xe2   :  { %v800_v36 = vmul.f32 %v799_v30, %v1817_v27 }
  0xe3   :  { %v336_v41 = vpop.permute.xlu0 %335  ;;  %v338_v45 = vpop.permute.xlu1 %337 }
  0xe4   :  { %v340_v48 = vsel %vm339_vm3, %v336_v41, %v338_v45  ;;  %v341_v49 = vsel %vm339_vm3, %v338_v45, %v336_v41  ;;  %vm343_vm3 = vmand %vm143_vm6, %vm2976_vm2  ;;  %v821_v45 = vstv %s2081_s13  ;;  %s2315_s13 = sld [smem:[#allocation4 + $0x55]] }
  0xe5   :  { %v344_v55 = vsel %vm342_vm13, %v341_v49, 0.0  ;;  %v345_v3 = vsel %vm343_vm3, %v340_v48, 0.0  ;;  %vm369_vm13 = vmand %vm145_vm10, %vm155_vm7  ;;  %v822_v51 = vmul.f32 %v821_v45, %v1814_v23 }
  0xe6   :  { %v2038_v0 = vadd.f32 %v344_v55, %v242_v29  ;;  %v2043_v5 = vadd.f32 %v345_v3, %v243_v53  ;;  %vm394_vm6 = vmand %vm144_vm1, %vm2979_vm8  ;;  %v797_v29 = vstv %s2060_s10  ;;  %v845_v3 = vstv %s2102_s16  ;;  %s2292_s10 = sld [smem:[#allocation4 + $0x54]] }
  0xe7   :  { %vm395_vm3 = vmand %vm145_vm10, %vm2978_vm9  ;;  %v798_v35 = vmul.f32 %v797_v29, %v1814_v23  ;;  %s2338_s16 = sld [smem:[#allocation4 + $0x56]] }
  0xe8   :  { %v718_v56 = vld.sshfl [vmem:[#allocation1 + $0x8] sm:$0xff pattern:$0x73625140]  ;;  %v717_v60 = vld.sshfl [vmem:[#allocation1] sm:$0xff pattern:$0x73625140] }
  0xe9   :  { %723 = vrot.lane.b32.xlu1 %v718_v56, %s1757_s9  ;;  %721 = vrot.lane.b32.xlu0 %v717_v60, %s1757_s9  ;;  %740 = vst [vmem:[#allocation1] ss:$4 sm:$0xff] %v738_v32  ;;  %v801_v41 = vadd.f32 %v800_v36, %v798_v35  ;;  %v895_v35 = vstv %s2144_s21  ;;  %v897_v36 = vstv %s2154_s22  ;;  %s2282_s9 = sld [smem:[#allocation4 + $0x23]] }
  0xea   :  { %s2370_s21 = sld [smem:[#allocation4 + $0x27]] }
  0xeb   :  { %v364_v8 = vpop.permute.xlu0 %363  ;;  %v440_v55 = vpop.permute.xlu2 %439  ;;  %s2380_s22 = sld [smem:[#allocation4 + $0x58]] }
  0xec   :  { %v366_v9 = vsel %vm365_vm15, %v362_v4, %v364_v8  ;;  %v367_v10 = vsel %vm365_vm15, %v364_v8, %v362_v4  ;;  %vm417_vm15 = vcmp.lt.s32.totalorder %v1862_v42, 33  ;;  %v847_v4 = vstv %s1531_s17  ;;  %s1769_s17 = smov 109  }
  0xed   :  { %v370_v12 = vsel %vm368_vm0, %v367_v10, 0.0  ;;  %v371_v13 = vsel %vm369_vm13, %v366_v9, 0.0  ;;  %vm2995_vm0 = vcmp.ge.s32.totalorder %v1890_v59, 1  ;;  %v846_v10 = vmul.f32 %v845_v3, %v1814_v23 }
  0xee   :  { %v2066_v2 = vadd.f32 %v370_v12, %v266_v6  ;;  %v2068_v1 = vadd.f32 %v371_v13, %v267_v7  ;;  %vm420_vm13 = vmand %vm144_vm1, %vm2995_vm0  ;;  %vm2997_vm0 = vcmp.lt.s32.totalorder %v1890_v59, 15 }
  0xf0   :  { %v742_v16 = vld.sshfl [vmem:[#allocation1 + $0x8] sm:$0xff pattern:$0x73625140]  ;;  %v741_v17 = vld.sshfl [vmem:[#allocation1] sm:$0xff pattern:$0x73625140] }
  0xf1   :  { %747 = vrot.lane.b32.xlu0 %v742_v16, %s1758_s12  ;;  %764 = vst [vmem:[#allocation1] ss:$4 sm:$0xff] %v762_v11  ;;  %745 = vrot.lane.b32.xlu2 %v741_v17, %s1758_s12  ;;  %v848_v11 = vmul.f32 %v847_v4, %v1817_v27  ;;  %s2305_s12 = sld [smem:[#allocation4 + $0x24]] }
  0xf3   :  { %v388_v20 = vpop.permute.xlu1 %387  ;;  %v849_v14 = vadd.f32 %v848_v11, %v846_v10 }
  0xf4   :  { %v392_v22 = vsel %vm391_vm4, %v388_v20, %v390_v21  ;;  %v393_v24 = vsel %vm391_vm4, %v390_v21, %v388_v20  ;;  %vm2996_vm4 = vcmp.ge.s32.totalorder %v1893_v62, 1  ;;  %v871_v20 = vstv %s2131_s19  ;;  %s2361_s19 = sld [smem:[#allocation4 + $0x57]] }
  0xf5   :  { %v396_v26 = vsel %vm394_vm6, %v393_v24, 0.0  ;;  %v397_v28 = vsel %vm395_vm3, %v392_v22, 0.0  ;;  %vm421_vm6 = vmand %vm145_vm10, %vm2996_vm4  ;;  %vm443_vm3 = vcmp.lt.s32.totalorder %v1862_v42, 32  ;;  %vm2998_vm4 = vcmp.lt.s32.totalorder %v1893_v62, 15 }
  0xf6   :  { %v2086_v31 = vadd.f32 %v396_v26, %v2003_v44  ;;  %v2089_v32 = vadd.f32 %v397_v28, %v2013_v46  ;;  %v823_v46 = vstv %s1529_s14  ;;  %v870_v24 = vmul.f32 %v869_v19, %v1814_v23  ;;  %s1768_s14 = smov 110  }
  0xf7   :  { %v824_v53 = vmul.f32 %v823_v46, %v1817_v27 }
  0xf8   :  { %v765_v33 = vld.sshfl [vmem:[#allocation1] sm:$0xff pattern:$0x73625140]  ;;  %v766_v34 = vld.sshfl [vmem:[#allocation1 + $0x8] sm:$0xff pattern:$0x73625140] }
  0xf9   :  { %769 = vrot.lane.b32.xlu1 %v765_v33, %s1759_s15  ;;  %788 = vst [vmem:[#allocation1] ss:$4 sm:$0xff] %v786_v25  ;;  %771 = vrot.lane.b32.xlu2 %v766_v34, %s1759_s15  ;;  %v825_v61 = vadd.f32 %v824_v53, %v822_v51  ;;  %v872_v25 = vmul.f32 %v871_v20, %v1817_v27  ;;  %v921_v53 = vstv %s2167_s24  ;;  %s2328_s15 = sld [smem:[#allocation4 + $0x25]] }
  0xfa   :  { %s2389_s24 = sld [smem:[#allocation4 + $0x28]] }
  0xfb   :  { %v416_v37 = vpop.permute.xlu1 %415  ;;  %v414_v38 = vpop.permute.xlu0 %413  ;;  %v873_v29 = vadd.f32 %v872_v25, %v870_v24 }
  0xfc   :  { %v418_v39 = vsel %vm417_vm15, %v414_v38, %v416_v37  ;;  %v419_v40 = vsel %vm417_vm15, %v416_v37, %v414_v38  ;;  %vm467_vm15 = vcmp.lt.s32.totalorder %v1862_v42, 31 }
  0xfd   :  { %v422_v43 = vsel %vm420_vm13, %v419_v40, 0.0  ;;  %v423_v44 = vsel %vm421_vm6, %v418_v39, 0.0  ;;  %vm470_vm13 = vmand %vm144_vm1, %vm2997_vm0  ;;  %v896_v40 = vmul.f32 %v895_v35, %v1814_v23 }
  0xfe   :  { %v2106_v47 = vadd.f32 %v422_v43, %v2022_v52  ;;  %v2109_v48 = vadd.f32 %v423_v44, %v2031_v54  ;;  %vm471_vm6 = vmand %vm145_vm10, %vm2998_vm4 }
  0xff   :  { %vm497_vm0 = vmand %vm145_vm10, %vm2982_vm14 }
 0x100   :  { %v2111_v49 = vld.sshfl [vmem:[#allocation1] sm:$0xff pattern:$0x73625140]  ;;  %v2113_v50 = vld.sshfl [vmem:[#allocation1 + $0x8] sm:$0xff pattern:$0x73625140]  ;;  %vm522_vm4 = vmand %vm144_vm1, %vm2977_vm12 }
 0x101   :  { %803 = vst [vmem:[#allocation1] ss:$4 sm:$0xff] %v801_v41  ;;  %v2180_v41 = vld [vmem:[#allocation3] sm:$0xf] }
 0x103   :  { %v442_v56 = vpop.permute.xlu0 %441 }
 0x104   :  { %v444_v52 = vsel %vm443_vm3, %v440_v55, %v442_v56  ;;  %v445_v60 = vsel %vm443_vm3, %v442_v56, %v440_v55  ;;  %vm493_vm3 = vcmp.lt.s32.totalorder %v1862_v42, 30 }
 0x105   :  { %v446_v54 = vsel %vm144_vm1, %v445_v60, 0.0  ;;  %v447_v63 = vsel %vm145_vm10, %v444_v52, 0.0  ;;  %v923_v52 = vstv %s2177_s25  ;;  %s1557_s25 = sld [smem:[#allocation4 + $0x59]] }
 0x106   :  { %v2126_v6 = vadd.f32 %v446_v54, %v2038_v0  ;;  %v2129_v7 = vadd.f32 %v447_v63, %v2043_v5  ;;  %v466_v5 = vpop.permute.xlu2 %465 }
 0x108   :  { %v805_v8 = vld.sshfl [vmem:[#allocation1 + $0x8] sm:$0xff pattern:$0x73625140]  ;;  %v804_v9 = vld.sshfl [vmem:[#allocation1] sm:$0xff pattern:$0x73625140] }
 0x109   :  { %810 = vrot.lane.b32.xlu1 %v805_v8, %s1760_s20  ;;  %808 = vrot.lane.b32.xlu0 %v804_v9, %s1760_s20  ;;  %827 = vst [vmem:[#allocation1] ss:$4 sm:$0xff] %v825_v61  ;;  %s1770_s20 = smov 99  }
 0x10b   :  { %v464_v0 = vpop.permute.xlu1 %463 }
 0x10c   :  { %v468_v12 = vsel %vm467_vm15, %v464_v0, %v466_v5  ;;  %v469_v13 = vsel %vm467_vm15, %v466_v5, %v464_v0  ;;  %vm496_vm15 = vmand %vm144_vm1, %vm162_vm11  ;;  %vm146_vm1 = vcmp.ge.s32.totalorder %v1886_v57, 1  ;;  %v947_v5 = vstv %s2193_s26  ;;  %s1558_s26 = sld [smem:[#allocation4 + $0x29]] }
 0x10d   :  { %v472_v15 = vsel %vm470_vm13, %v469_v13, 0.0  ;;  %v473_v16 = vsel %vm471_vm6, %v468_v12, 0.0  ;;  %vm519_vm13 = vcmp.lt.s32.totalorder %v1862_v42, 29  ;;  %vm523_vm6 = vmand %vm145_vm10, %vm2976_vm2  ;;  %vm147_vm10 = vcmp.ge.s32.totalorder %v1888_v58, 1 }
 0x10e   :  { %v2147_v17 = vadd.f32 %v472_v15, %v2066_v2  ;;  %v2150_v18 = vadd.f32 %v473_v16, %v2068_v1  ;;  %v516_v39 = vpop.permute.xlu2 %515  ;;  %v949_v12 = vstv %s2203_s1  ;;  %s1559_s1 = sld [smem:[#allocation4 + $0x5a]] }
 0x110   :  { %v829_v21 = vld.sshfl [vmem:[#allocation1 + $0x8] sm:$0xff pattern:$0x73625140]  ;;  %v828_v22 = vld.sshfl [vmem:[#allocation1] sm:$0xff pattern:$0x73625140] }
 0x111   :  { %834 = vrot.lane.b32.xlu0 %v829_v21, %s1761_s23  ;;  %851 = vst [vmem:[#allocation1] ss:$4 sm:$0xff] %v849_v14  ;;  %832 = vrot.lane.b32.xlu2 %v828_v22, %s1761_s23  ;;  %s1771_s23 = smov 98  }
 0x113   :  { %v492_v2 = vpop.permute.xlu1 %491  ;;  %v490_v1 = vpop.permute.xlu0 %489 }
 0x114   :  { %v494_v26 = vsel %vm493_vm3, %v490_v1, %v492_v2  ;;  %v495_v28 = vsel %vm493_vm3, %v492_v2, %v490_v1  ;;  %vm545_vm3 = vcmp.lt.s32.totalorder %v1862_v42, 19  ;;  %v971_v1 = vstv %s2217_s27  ;;  %s2415_s27 = sld [smem:[#allocation4 + $0x2a]] }
 0x115   :  { %v498_v27 = vsel %vm496_vm15, %v495_v28, 0.0  ;;  %v499_v30 = vsel %vm497_vm0, %v494_v26, 0.0  ;;  %vm548_vm15 = vmand %vm146_vm1, %vm154_vm5  ;;  %v973_v26 = vstv %s2227_s28  ;;  %s2417_s28 = sld [smem:[#allocation4 + $0x5b]] }
 0x116   :  { %v2170_v33 = vadd.f32 %v498_v27, %v2086_v31  ;;  %v2173_v34 = vadd.f32 %v499_v30, %v2089_v32  ;;  %v898_v31 = vmul.f32 %v2180_v41, %v897_v36  ;;  %vm549_vm0 = vmand %vm147_vm10, %vm155_vm7  ;;  %v544_v63 = vpop.permute.xlu2 %543 }
 0x118   :  { %v852_v37 = vld.sshfl [vmem:[#allocation1] sm:$0xff pattern:$0x73625140]  ;;  %v853_v38 = vld.sshfl [vmem:[#allocation1 + $0x8] sm:$0xff pattern:$0x73625140]  ;;  %v899_v45 = vadd.f32 %v898_v31, %v896_v40 }
 0x119   :  { %856 = vrot.lane.b32.xlu1 %v852_v37, %s1762_s0  ;;  %875 = vst [vmem:[#allocation1] ss:$4 sm:$0xff] %v873_v29  ;;  %858 = vrot.lane.b32.xlu2 %v853_v38, %s1762_s0  ;;  %s1772_s0 = smov 97  }
 0x11b   :  { %v518_v32 = vpop.permute.xlu0 %517 }
 0x11c   :  { %v520_v43 = vsel %vm519_vm13, %v516_v39, %v518_v32  ;;  %v521_v44 = vsel %vm519_vm13, %v518_v32, %v516_v39  ;;  %vm571_vm13 = vcmp.lt.s32.totalorder %v1862_v42, 18  ;;  %v997_v32 = vstv %s2240_s30  ;;  %s2426_s30 = sld [smem:[#allocation4 + $0x2b]] }
 0x11d   :  { %v524_v46 = vsel %vm522_vm4, %v521_v44, 0.0  ;;  %v525_v51 = vsel %vm523_vm6, %v520_v43, 0.0  ;;  %vm574_vm4 = vmand %vm146_vm1, %vm2979_vm8  ;;  %v999_v43 = vstv %s2250_s4  ;;  %s2436_s4 = sld [smem:[#allocation4 + $0x5c]] }
 0x11e   :  { %v2196_v55 = vadd.f32 %v524_v46, %v2106_v47  ;;  %v2199_v56 = vadd.f32 %v525_v51, %v2109_v48  ;;  %v922_v47 = vmul.f32 %v921_v53, %v1814_v23  ;;  %v924_v48 = vmul.f32 %v2180_v41, %v923_v52  ;;  %vm575_vm6 = vmand %vm147_vm10, %vm2978_vm9  ;;  %v594_v28 = vpop.permute.xlu2 %593 }
 0x120   :  { %v877_v60 = vld.sshfl [vmem:[#allocation1 + $0x8] sm:$0xff pattern:$0x73625140]  ;;  %v876_v61 = vld.sshfl [vmem:[#allocation1] sm:$0xff pattern:$0x73625140]  ;;  %v925_v10 = vadd.f32 %v924_v48, %v922_v47 }
 0x121   :  { %882 = vrot.lane.b32.xlu1 %v877_v60, %s1763_s2  ;;  %880 = vrot.lane.b32.xlu0 %v876_v61, %s1763_s2  ;;  %901 = vst [vmem:[#allocation1] ss:$4 sm:$0xff] %v899_v45  ;;  %s1773_s2 = smov 96  }
 0x123   :  { %v542_v54 = vpop.permute.xlu1 %541 }
 0x124   :  { %v546_v3 = vsel %vm545_vm3, %v542_v54, %v544_v63  ;;  %v547_v4 = vsel %vm545_vm3, %v544_v63, %v542_v54  ;;  %vm597_vm3 = vcmp.lt.s32.totalorder %v1862_v42, 17  ;;  %v1023_v63 = vstv %s2263_s6  ;;  %s2445_s6 = sld [smem:[#allocation4 + $0x2c]] }
 0x125   :  { %v550_v8 = vsel %vm548_vm15, %v547_v4, 0.0  ;;  %v551_v9 = vsel %vm549_vm0, %v546_v3, 0.0  ;;  %vm2999_vm15 = vcmp.ge.s32.totalorder %v1890_v59, 1  ;;  %v1025_v3 = vstv %s2273_s7  ;;  %s2455_s7 = sld [smem:[#allocation4 + $0x5d]] }
 0x126   :  { %v2220_v11 = vadd.f32 %v550_v8, %v2126_v6  ;;  %v2223_v0 = vadd.f32 %v551_v9, %v2129_v7  ;;  %v948_v6 = vmul.f32 %v947_v5, %v1814_v23  ;;  %v950_v7 = vmul.f32 %v2180_v41, %v949_v12  ;;  %vm600_vm0 = vmand %vm146_vm1, %vm2999_vm15  ;;  %v622_v46 = vpop.permute.xlu2 %621 }
 0x127   :  { %vm3001_vm15 = vcmp.lt.s32.totalorder %v1890_v59, 15 }
 0x128   :  { %v903_v13 = vld.sshfl [vmem:[#allocation1 + $0x8] sm:$0xff pattern:$0x73625140]  ;;  %v902_v14 = vld.sshfl [vmem:[#allocation1] sm:$0xff pattern:$0x73625140]  ;;  %v951_v24 = vadd.f32 %v950_v7, %v948_v6 }
 0x129   :  { %908 = vrot.lane.b32.xlu0 %v903_v13, %s1764_s29  ;;  %927 = vst [vmem:[#allocation1] ss:$4 sm:$0xff] %v925_v10  ;;  %906 = vrot.lane.b32.xlu2 %v902_v14, %s1764_s29  ;;  %s1774_s29 = smov 95  }
 0x12b   :  { %v570_v15 = vpop.permute.xlu1 %569  ;;  %v568_v16 = vpop.permute.xlu0 %567 }
 0x12c   :  { %v572_v19 = vsel %vm571_vm13, %v568_v16, %v570_v15  ;;  %v573_v20 = vsel %vm571_vm13, %v570_v15, %v568_v16  ;;  %vm3000_vm13 = vcmp.ge.s32.totalorder %v1893_v62, 1  ;;  %v1049_v16 = vstv %s2282_s9  ;;  %s2465_s9 = sld [smem:[#allocation4 + $0x2d]] }
 0x12d   :  { %v576_v21 = vsel %vm574_vm4, %v573_v20, 0.0  ;;  %v577_v22 = vsel %vm575_vm6, %v572_v19, 0.0  ;;  %vm601_vm4 = vmand %vm147_vm10, %vm3000_vm13  ;;  %vm623_vm6 = vcmp.lt.s32.totalorder %v1862_v42, 16  ;;  %vm3002_vm13 = vcmp.lt.s32.totalorder %v1893_v62, 15 }
 0x12e   :  { %v2243_v25 = vadd.f32 %v576_v21, %v2147_v17  ;;  %v2246_v2 = vadd.f32 %v577_v22, %v2150_v18  ;;  %v972_v17 = vmul.f32 %v971_v1, %v1814_v23  ;;  %v974_v18 = vmul.f32 %v2180_v41, %v973_v26 }
 0x12f   :  { %v1051_v19 = vstv %s2292_s10  ;;  %s2475_s10 = sld [smem:[#allocation4 + $0x5e]] }
 0x130   :  { %v928_v29 = vld.sshfl [vmem:[#allocation1] sm:$0xff pattern:$0x73625140]  ;;  %v929_v27 = vld.sshfl [vmem:[#allocation1 + $0x8] sm:$0xff pattern:$0x73625140]  ;;  %v975_v39 = vadd.f32 %v974_v18, %v972_v17 }
 0x131   :  { %932 = vrot.lane.b32.xlu1 %v928_v29, %s1765_s5  ;;  %953 = vst [vmem:[#allocation1] ss:$4 sm:$0xff] %v951_v24  ;;  %934 = vrot.lane.b32.xlu2 %v929_v27, %s1765_s5  ;;  %s1775_s5 = smov 94  }
 0x133   :  { %v596_v30 = vpop.permute.xlu0 %595  ;;  %v670_v20 = vpop.permute.xlu2 %669 }
 0x134   :  { %v598_v35 = vsel %vm597_vm3, %v594_v28, %v596_v30  ;;  %v599_v36 = vsel %vm597_vm3, %v596_v30, %v594_v28  ;;  %vm647_vm3 = vcmp.lt.s32.totalorder %v1862_v42, 15  ;;  %v1075_v30 = vstv %s2305_s12  ;;  %s2499_s12 = sld [smem:[#allocation4 + $0x2e]] }
 0x135   :  { %v602_v37 = vsel %vm600_vm0, %v599_v36, 0.0  ;;  %v603_v38 = vsel %vm601_vm4, %v598_v35, 0.0  ;;  %vm650_vm0 = vmand %vm146_vm1, %vm3001_vm15  ;;  %v1077_v35 = vstv %s2315_s13  ;;  %s2507_s13 = sld [smem:[#allocation4 + $0x5f]] }
 0x136   :  { %v2266_v40 = vadd.f32 %v602_v37, %v2170_v33  ;;  %v2269_v31 = vadd.f32 %v603_v38, %v2173_v34  ;;  %v998_v33 = vmul.f32 %v997_v32, %v1814_v23  ;;  %v1000_v34 = vmul.f32 %v2180_v41, %v999_v43  ;;  %vm651_vm4 = vmand %vm147_vm10, %vm3002_vm13 }
 0x137   :  { %vm677_vm15 = vmand %vm147_vm10, %vm2982_vm14 }
 0x138   :  { %v955_v44 = vld.sshfl [vmem:[#allocation1 + $0x8] sm:$0xff pattern:$0x73625140]  ;;  %v954_v45 = vld.sshfl [vmem:[#allocation1] sm:$0xff pattern:$0x73625140]  ;;  %v1001_v47 = vadd.f32 %v1000_v34, %v998_v33  ;;  %vm702_vm13 = vmand %vm146_vm1, %vm2977_vm12 }
 0x139   :  { %960 = vrot.lane.b32.xlu1 %v955_v44, %s1766_s8  ;;  %958 = vrot.lane.b32.xlu0 %v954_v45, %s1766_s8  ;;  %977 = vst [vmem:[#allocation1] ss:$4 sm:$0xff] %v975_v39  ;;  %s1776_s8 = smov 93  }
 0x13b   :  { %v620_v51 = vpop.permute.xlu1 %619  ;;  %v698_v38 = vpop.permute.xlu2 %697 }
 0x13c   :  { %v624_v53 = vsel %vm623_vm6, %v620_v51, %v622_v46  ;;  %v625_v52 = vsel %vm623_vm6, %v622_v46, %v620_v51  ;;  %vm673_vm6 = vcmp.lt.s32.totalorder %v1862_v42, 14  ;;  %v1101_v51 = vstv %s2328_s15  ;;  %s2520_s15 = sld [smem:[#allocation4 + $0x2f]] }
 0x13d   :  { %v626_v60 = vsel %vm146_vm1, %v625_v52, 0.0  ;;  %v627_v61 = vsel %vm147_vm10, %v624_v53, 0.0  ;;  %v1103_v53 = vstv %s2338_s16  ;;  %s2530_s16 = sld [smem:[#allocation4 + $0x60]] }
 0x13e   :  { %v2285_v48 = vadd.f32 %v626_v60, %v2196_v55  ;;  %v2288_v54 = vadd.f32 %v627_v61, %v2199_v56  ;;  %v1024_v55 = vmul.f32 %v1023_v63, %v1814_v23  ;;  %v1026_v56 = vmul.f32 %v2180_v41, %v1025_v3 }
 0x13f   :  { %v1102_v61 = vmul.f32 %v1101_v51, %v1814_v23 }
 0x140   :  { %v979_v4 = vld.sshfl [vmem:[#allocation1 + $0x8] sm:$0xff pattern:$0x73625140]  ;;  %v978_v8 = vld.sshfl [vmem:[#allocation1] sm:$0xff pattern:$0x73625140]  ;;  %v1027_v6 = vadd.f32 %v1026_v56, %v1024_v55 }
 0x141   :  { %984 = vrot.lane.b32.xlu0 %v979_v4, %s1767_s11  ;;  %1003 = vst [vmem:[#allocation1] ss:$4 sm:$0xff] %v1001_v47  ;;  %982 = vrot.lane.b32.xlu2 %v978_v8, %s1767_s11  ;;  %s1777_s11 = smov 83  }
 0x143   :  { %v646_v9 = vpop.permute.xlu1 %645  ;;  %v644_v10 = vpop.permute.xlu0 %643 }
 0x144   :  { %v648_v5 = vsel %vm647_vm3, %v644_v10, %v646_v9  ;;  %v649_v12 = vsel %vm647_vm3, %v646_v9, %v644_v10  ;;  %vm676_vm3 = vmand %vm146_vm1, %vm162_vm11  ;;  %vm725_vm1 = vcmp.lt.s32.totalorder %v1862_v42, 3  ;;  %v1127_v10 = vstv %s2351_s18  ;;  %s2543_s18 = sld [smem:[#allocation4 + $0x30]] }
 0x145   :  { %v652_v13 = vsel %vm650_vm0, %v649_v12, 0.0  ;;  %v653_v14 = vsel %vm651_vm4, %v648_v5, 0.0  ;;  %vm699_vm0 = vcmp.lt.s32.totalorder %v1862_v42, 13  ;;  %vm703_vm4 = vmand %vm147_vm10, %vm2976_vm2  ;;  %v1129_v5 = vstv %s2361_s19  ;;  %s2553_s19 = sld [smem:[#allocation4 + $0x61]] }
 0x146   :  { %v2308_v7 = vadd.f32 %v652_v13, %v2220_v11  ;;  %v2311_v15 = vadd.f32 %v653_v14, %v2223_v0  ;;  %v1050_v11 = vmul.f32 %v1049_v16, %v1814_v23  ;;  %v1052_v0 = vmul.f32 %v2180_v41, %v1051_v19 }
 0x147   :  { %vm749_vm10 = vcmp.lt.s32.totalorder %v1862_v42, 2 }
 0x148   :  { %v1004_v21 = vld.sshfl [vmem:[#allocation1] sm:$0xff pattern:$0x73625140]  ;;  %v1005_v22 = vld.sshfl [vmem:[#allocation1 + $0x8] sm:$0xff pattern:$0x73625140]  ;;  %v1053_v27 = vadd.f32 %v1052_v0, %v1050_v11 }
 0x149   :  { %1008 = vrot.lane.b32.xlu1 %v1004_v21, %s1768_s14  ;;  %1029 = vst [vmem:[#allocation1] ss:$4 sm:$0xff] %v1027_v6  ;;  %1010 = vrot.lane.b32.xlu2 %v1005_v22, %s1768_s14  ;;  %v1130_v6 = vmul.f32 %v2180_v41, %v1129_v5  ;;  %v1229_v5 = vstv %s2415_s27  ;;  %s1778_s14 = smov 82  }
 0x14b   :  { %v672_v24 = vpop.permute.xlu0 %671  ;;  %v746_v12 = vpop.permute.xlu2 %745 }
 0x14c   :  { %v674_v1 = vsel %vm673_vm6, %v670_v20, %v672_v24  ;;  %v675_v26 = vsel %vm673_vm6, %v672_v24, %v670_v20  ;;  %v1151_v24 = vstv %s2370_s21  ;;  %vm773_vm6 = vcmp.lt.s32.totalorder %v1862_v42, 1  ;;  %s1781_s21 = smov 79  }
 0x14d   :  { %v678_v28 = vsel %vm676_vm3, %v675_v26, 0.0  ;;  %v679_v29 = vsel %vm677_vm15, %v674_v1, 0.0  ;;  %v1153_v1 = vstv %s2380_s22  ;;  %vm3003_vm3 = vcmp.ge.s32.totalorder %v1890_v59, 1  ;;  %s1782_s22 = smov 78  }
 0x14e   :  { %v2331_v17 = vadd.f32 %v678_v28, %v2243_v25  ;;  %v2334_v18 = vadd.f32 %v679_v29, %v2246_v2  ;;  %v1076_v25 = vmul.f32 %v1075_v30, %v1814_v23  ;;  %v1078_v2 = vmul.f32 %v2180_v41, %v1077_v35 }
 0x14f   :  { %vm3004_vm15 = vcmp.ge.s32.totalorder %v1893_v62, 1 }
 0x150   :  { %v1031_v36 = vld.sshfl [vmem:[#allocation1 + $0x8] sm:$0xff pattern:$0x73625140]  ;;  %v1030_v37 = vld.sshfl [vmem:[#allocation1] sm:$0xff pattern:$0x73625140]  ;;  %v1079_v46 = vadd.f32 %v1078_v2, %v1076_v25 }
 0x151   :  { %1036 = vrot.lane.b32.xlu1 %v1031_v36, %s1769_s17  ;;  %1034 = vrot.lane.b32.xlu0 %v1030_v37, %s1769_s17  ;;  %1055 = vst [vmem:[#allocation1] ss:$4 sm:$0xff] %v1053_v27  ;;  %v1152_v27 = vmul.f32 %v1151_v24, %v1814_v23  ;;  %s1779_s17 = smov 81  }
 0x153   :  { %v696_v39 = vpop.permute.xlu1 %695  ;;  %v772_v29 = vpop.permute.xlu2 %771 }
 0x154   :  { %v700_v32 = vsel %vm699_vm0, %v696_v39, %v698_v38  ;;  %v701_v43 = vsel %vm699_vm0, %v698_v38, %v696_v39  ;;  %v1177_v39 = vstv %s2389_s24  ;;  %vm812_vm0 = vcmp.lt.s32.totalorder %v1862_v42, 127  ;;  %s1784_s24 = smov [#allocation11]  }
 0x155   :  { %v704_v44 = vsel %vm702_vm13, %v701_v43, 0.0  ;;  %v705_v45 = vsel %vm703_vm4, %v700_v32, 0.0  ;;  %v1179_v32 = vstv %s1557_s25  ;;  %vm3005_vm13 = vcmp.lt.s32.totalorder %v1890_v59, 15  ;;  %s1463_s25 = sshll.u32 %s1784_s24, 4  ;;  %s1464_s25 = int_to_ptr.vmem [resolvable:$true] %s1463_s25 }
 0x156   :  { %v2354_v33 = vadd.f32 %v704_v44, %v2266_v40  ;;  %v2357_v34 = vadd.f32 %v705_v45, %v2269_v31  ;;  %v1104_v40 = vmul.f32 %v2180_v41, %v1103_v53  ;;  %v1178_v45 = vmul.f32 %v1177_v39, %v1814_v23 }
 0x157   :  { %v1205_v53 = vstv %s1559_s1  ;;  %vm3006_vm4 = vcmp.lt.s32.totalorder %v1893_v62, 15  ;;  %s1465_s1 = sshll.u32 %s2971_s3, 4  ;;  %s1466_s1 = int_to_ptr.hbm [resolvable:$true] %s1465_s1 }
 0x158   :  { %v1057_v52 = vld.sshfl [vmem:[#allocation1 + $0x8] sm:$0xff pattern:$0x73625140]  ;;  %v1056_v60 = vld.sshfl [vmem:[#allocation1] sm:$0xff pattern:$0x73625140]  ;;  %v1105_v55 = vadd.f32 %v1104_v40, %v1102_v61  ;;  %v1206_v61 = vmul.f32 %v2180_v41, %v1205_v53  ;;  %v794_v53 = vadd.f32 %v2113_v50, %v2357_v34 }
 0x159   :  { %1062 = vrot.lane.b32.xlu0 %v1057_v52, %s1770_s20  ;;  %1081 = vst [vmem:[#allocation1] ss:$4 sm:$0xff] %v1079_v46  ;;  %1060 = vrot.lane.b32.xlu2 %v1056_v60, %s1770_s20  ;;  %v1180_v46 = vmul.f32 %v2180_v41, %v1179_v32  ;;  %v1281_v32 = vstv %s2445_s6  ;;  %s1780_s20 = smov 80  }
 0x15b   :  { %v724_v31 = vpop.permute.xlu1 %723  ;;  %v722_v47 = vpop.permute.xlu0 %721  ;;  %v1181_v51 = vadd.f32 %v1180_v46, %v1178_v45 }
 0x15c   :  { %v726_v63 = vsel %vm725_vm1, %v722_v47, %v724_v31  ;;  %v727_v3 = vsel %vm725_vm1, %v724_v31, %v722_v47  ;;  %vm836_vm1 = vcmp.lt.s32.totalorder %v1862_v42, 126 }
 0x15d   :  { %v728_v4 = vsel %vm154_vm5, %v727_v3, 0.0  ;;  %v729_v8 = vsel %vm155_vm7, %v726_v63, 0.0 }
 0x15e   :  { %v2373_v56 = vadd.f32 %v728_v4, %v2285_v48  ;;  %v2376_v9 = vadd.f32 %v729_v8, %v2288_v54  ;;  %v1128_v48 = vmul.f32 %v1127_v10, %v1814_v23 }
 0x160   :  { %v1082_v13 = vld.sshfl [vmem:[#allocation1] sm:$0xff pattern:$0x73625140]  ;;  %v1083_v14 = vld.sshfl [vmem:[#allocation1 + $0x8] sm:$0xff pattern:$0x73625140]  ;;  %v1131_v22 = vadd.f32 %v1130_v6, %v1128_v48 }
 0x161   :  { %1086 = vrot.lane.b32.xlu1 %v1082_v13, %s1771_s23  ;;  %1107 = vst [vmem:[#allocation1] ss:$4 sm:$0xff] %v1105_v55  ;;  %1088 = vrot.lane.b32.xlu2 %v1083_v14, %s1771_s23  ;;  %s1783_s23 = smov 77  }
 0x163   :  { %v748_v54 = vpop.permute.xlu0 %747 }
 0x164   :  { %v750_v16 = vsel %vm749_vm10, %v746_v12, %v748_v54  ;;  %v751_v19 = vsel %vm749_vm10, %v748_v54, %v746_v12  ;;  %v1231_v12 = vstv %s2417_s28  ;;  %vm860_vm10 = vcmp.lt.s32.totalorder %v1862_v42, 125 }
 0x165   :  { %v752_v20 = vsel %vm2979_vm8, %v751_v19, 0.0  ;;  %v753_v21 = vsel %vm2978_vm9, %v750_v16, 0.0 }
 0x166   :  { %v2392_v11 = vadd.f32 %v752_v20, %v2308_v7  ;;  %v2395_v0 = vadd.f32 %v753_v21, %v2311_v15  ;;  %v1154_v7 = vmul.f32 %v2180_v41, %v1153_v1  ;;  %v1255_v1 = vstv %s2426_s30 }
 0x168   :  { %v1109_v26 = vld.sshfl [vmem:[#allocation1 + $0x8] sm:$0xff pattern:$0x73625140]  ;;  %v1108_v28 = vld.sshfl [vmem:[#allocation1] sm:$0xff pattern:$0x73625140]  ;;  %v1155_v38 = vadd.f32 %v1154_v7, %v1152_v27 }
 0x169   :  { %1114 = vrot.lane.b32.xlu1 %v1109_v26, %s1772_s0  ;;  %1112 = vrot.lane.b32.xlu0 %v1108_v28, %s1772_s0  ;;  %1133 = vst [vmem:[#allocation1] ss:$4 sm:$0xff] %v1131_v22  ;;  %v1257_v26 = vstv %s2436_s4 }
 0x16a   :  { %v1258_v7 = vmul.f32 %v2180_v41, %v1257_v26 }
 0x16b   :  { %v770_v30 = vpop.permute.xlu1 %769  ;;  %v833_v13 = vpop.permute.xlu2 %832 }
 0x16c   :  { %v774_v15 = vsel %vm773_vm6, %v770_v30, %v772_v29  ;;  %v775_v35 = vsel %vm773_vm6, %v772_v29, %v770_v30  ;;  %vm148_vm6 = vcmp.lt.s32.totalorder %v1886_v57, 15 }
 0x16d   :  { %v776_v36 = vsel %vm3003_vm3, %v775_v35, 0.0  ;;  %v777_v37 = vsel %vm3004_vm15, %v774_v15, 0.0  ;;  %vm149_vm3 = vcmp.lt.s32.totalorder %v1888_v58, 15  ;;  %vm884_vm15 = vcmp.lt.s32.totalorder %v1862_v42, 115 }
 0x16e   :  { %v2407_v25 = vadd.f32 %v776_v36, %v2331_v17  ;;  %v2410_v2 = vadd.f32 %v777_v37, %v2334_v18  ;;  %v1203_v17 = vstv %s1558_s26 }
 0x16f   :  { %v1204_v60 = vmul.f32 %v1203_v17, %v1814_v23 }
 0x170   :  { %v1135_v43 = vld.sshfl [vmem:[#allocation1 + $0x8] sm:$0xff pattern:$0x73625140]  ;;  %v1134_v44 = vld.sshfl [vmem:[#allocation1] sm:$0xff pattern:$0x73625140] }
 0x171   :  { %1140 = vrot.lane.b32.xlu0 %v1135_v43, %s1773_s2  ;;  %1157 = vst [vmem:[#allocation1] ss:$4 sm:$0xff] %v1155_v38  ;;  %1138 = vrot.lane.b32.xlu2 %v1134_v44, %s1773_s2  ;;  %v1207_v8 = vadd.f32 %v1206_v61, %v1204_v60  ;;  %v1283_v43 = vstv %s2455_s7 }
 0x172   :  { %v1284_v46 = vmul.f32 %v2180_v41, %v1283_v43 }
 0x173   :  { %v859_v27 = vpop.permute.xlu2 %858 }
 0x178   :  { %v1158_v18 = vld.sshfl [vmem:[#allocation1] sm:$0xff pattern:$0x73625140]  ;;  %v1159_v52 = vld.sshfl [vmem:[#allocation1 + $0x8] sm:$0xff pattern:$0x73625140] }
 0x179   :  { %1162 = vrot.lane.b32.xlu1 %v1158_v18, %s1774_s29  ;;  %1183 = vst [vmem:[#allocation1] ss:$4 sm:$0xff] %v1181_v51  ;;  %1164 = vrot.lane.b32.xlu2 %v1159_v52, %s1774_s29  ;;  %v793_v18 = vadd.f32 %v2111_v49, %v2354_v33 }
 0x17b   :  { %v811_v40 = vpop.permute.xlu1 %810  ;;  %v809_v31 = vpop.permute.xlu0 %808 }
 0x17c   :  { %v813_v47 = vsel %vm812_vm0, %v809_v31, %v811_v40  ;;  %v814_v63 = vsel %vm812_vm0, %v811_v40, %v809_v31  ;;  %vm2483_vm0 = vmand %vm148_vm6, %vm154_vm5 }
 0x17d   :  { %v815_v3 = vsel %vm3005_vm13, %v813_v47, 0.0  ;;  %v816_v4 = vsel %vm3006_vm4, %v814_v63, 0.0  ;;  %vm888_vm13 = vmand %vm149_vm3, %vm155_vm7  ;;  %vm910_vm4 = vcmp.lt.s32.totalorder %v1862_v42, 114 }
 0x17e   :  { %v2429_v55 = vadd.f32 %v815_v3, %v2373_v56  ;;  %v2432_v10 = vadd.f32 %v816_v4, %v2376_v9  ;;  %v1230_v56 = vmul.f32 %v1229_v5, %v1814_v23  ;;  %v1232_v9 = vmul.f32 %v2180_v41, %v1231_v12 }
 0x17f   :  { %v1307_v3 = vstv %s2465_s9  ;;  %v1309_v4 = vstv %s2475_s10 }
 0x180   :  { %v1185_v14 = vld.sshfl [vmem:[#allocation1 + $0x8] sm:$0xff pattern:$0x73625140]  ;;  %v1184_v48 = vld.sshfl [vmem:[#allocation1] sm:$0xff pattern:$0x73625140]  ;;  %v1233_v21 = vadd.f32 %v1232_v9, %v1230_v56  ;;  %v1308_v33 = vmul.f32 %v1307_v3, %v1814_v23 }
 0x181   :  { %1190 = vrot.lane.b32.xlu1 %v1185_v14, %s1775_s5  ;;  %1188 = vrot.lane.b32.xlu0 %v1184_v48, %s1775_s5  ;;  %1209 = vst [vmem:[#allocation1] ss:$4 sm:$0xff] %v1207_v8  ;;  %v1310_v8 = vmul.f32 %v2180_v41, %v1309_v4 }
 0x183   :  { %v835_v6 = vpop.permute.xlu0 %834  ;;  %v907_v50 = vpop.permute.xlu2 %906  ;;  %v1311_v56 = vadd.f32 %v1310_v8, %v1308_v33 }
 0x184   :  { %v837_v54 = vsel %vm836_vm1, %v833_v13, %v835_v6  ;;  %v838_v16 = vsel %vm836_vm1, %v835_v6, %v833_v13  ;;  %vm913_vm1 = vmand %vm148_vm6, %vm2979_vm8 }
 0x185   :  { %v839_v19 = vsel %vm162_vm11, %v837_v54, 0.0  ;;  %v840_v20 = vsel %vm2982_vm14, %v838_v16, 0.0  ;;  %v1331_v54 = vstv %s2499_s12  ;;  %v1333_v16 = vstv %s2507_s13 }
 0x186   :  { %v2448_v22 = vadd.f32 %v839_v19, %v2392_v11  ;;  %v2451_v24 = vadd.f32 %v840_v20, %v2395_v0  ;;  %v1256_v11 = vmul.f32 %v1255_v1, %v1814_v23 }
 0x188   :  { %v1211_v28 = vld.sshfl [vmem:[#allocation1 + $0x8] sm:$0xff pattern:$0x73625140]  ;;  %v1210_v29 = vld.sshfl [vmem:[#allocation1] sm:$0xff pattern:$0x73625140]  ;;  %v1259_v37 = vadd.f32 %v1258_v7, %v1256_v11 }
 0x189   :  { %1216 = vrot.lane.b32.xlu0 %v1211_v28, %s1776_s8  ;;  %1235 = vst [vmem:[#allocation1] ss:$4 sm:$0xff] %v1233_v21  ;;  %1214 = vrot.lane.b32.xlu2 %v1210_v29, %s1776_s8 }
 0x18b   :  { %v857_v0 = vpop.permute.xlu1 %856  ;;  %v935_v21 = vpop.permute.xlu2 %934 }
 0x18c   :  { %v861_v30 = vsel %vm860_vm10, %v857_v0, %v859_v27  ;;  %v862_v15 = vsel %vm860_vm10, %v859_v27, %v857_v0  ;;  %vm914_vm10 = vmand %vm149_vm3, %vm2978_vm9 }
 0x18d   :  { %v863_v35 = vsel %vm2977_vm12, %v861_v30, 0.0  ;;  %v864_v36 = vsel %vm2976_vm2, %v862_v15, 0.0  ;;  %v1357_v30 = vstv %s2520_s15  ;;  %v1359_v15 = vstv %s2530_s16 }
 0x18e   :  { %v2468_v38 = vadd.f32 %v863_v35, %v2407_v25  ;;  %v2471_v39 = vadd.f32 %v864_v36, %v2410_v2  ;;  %v1282_v2 = vmul.f32 %v1281_v32, %v1814_v23 }
 0x190   :  { %v1236_v44 = vld.sshfl [vmem:[#allocation1] sm:$0xff pattern:$0x73625140]  ;;  %v1237_v45 = vld.sshfl [vmem:[#allocation1 + $0x8] sm:$0xff pattern:$0x73625140]  ;;  %v1285_v31 = vadd.f32 %v1284_v46, %v1282_v2 }
 0x191   :  { %1240 = vrot.lane.b32.xlu1 %v1236_v44, %s1777_s11  ;;  %1261 = vst [vmem:[#allocation1] ss:$4 sm:$0xff] %v1259_v37  ;;  %1242 = vrot.lane.b32.xlu2 %v1237_v45, %s1777_s11  ;;  %v1358_v37 = vmul.f32 %v1357_v30, %v1814_v23 }
 0x193   :  { %v883_v51 = vpop.permute.xlu1 %882  ;;  %v881_v17 = vpop.permute.xlu0 %880 }
 0x194   :  { %v885_v52 = vsel %vm884_vm15, %v881_v17, %v883_v51  ;;  %v886_v60 = vsel %vm884_vm15, %v883_v51, %v881_v17  ;;  %vm936_vm15 = vcmp.lt.s32.totalorder %v1862_v42, 113  ;;  %v1383_v17 = vstv %s2543_s18 }
 0x195   :  { %v889_v61 = vsel %vm2483_vm0, %v885_v52, 0.0  ;;  %v890_v40 = vsel %vm888_vm13, %v886_v60, 0.0  ;;  %vm3009_vm0 = vcmp.ge.s32.totalorder %v1890_v59, 1 }
 0x196   :  { %v2501_v47 = vadd.f32 %v889_v61, %v793_v18  ;;  %v2503_v63 = vadd.f32 %v890_v40, %v794_v53  ;;  %vm939_vm13 = vmand %vm148_vm6, %vm3009_vm0  ;;  %v1385_v53 = vstv %s2553_s19  ;;  %vm3011_vm0 = vcmp.lt.s32.totalorder %v1890_v59, 15 }
 0x198   :  { %v1263_v34 = vld.sshfl [vmem:[#allocation1 + $0x8] sm:$0xff pattern:$0x73625140]  ;;  %v1262_v49 = vld.sshfl [vmem:[#allocation1] sm:$0xff pattern:$0x73625140] }
 0x199   :  { %1268 = vrot.lane.b32.xlu1 %v1263_v34, %s1778_s14  ;;  %1266 = vrot.lane.b32.xlu0 %v1262_v49, %s1778_s14  ;;  %1287 = vst [vmem:[#allocation1] ss:$4 sm:$0xff] %v1285_v31 }
 0x19b   :  { %v909_v5 = vpop.permute.xlu0 %908  ;;  %v983_v18 = vpop.permute.xlu2 %982 }
 0x19c   :  { %v911_v12 = vsel %vm910_vm4, %v907_v50, %v909_v5  ;;  %v912_v13 = vsel %vm910_vm4, %v909_v5, %v907_v50  ;;  %vm3010_vm4 = vcmp.ge.s32.totalorder %v1893_v62, 1 }
 0x19d   :  { %v915_v14 = vsel %vm913_vm1, %v911_v12, 0.0  ;;  %v916_v48 = vsel %vm914_vm10, %v912_v13, 0.0  ;;  %vm940_vm1 = vmand %vm149_vm3, %vm3010_vm4  ;;  %vm962_vm10 = vcmp.lt.s32.totalorder %v1862_v42, 112  ;;  %vm3012_vm4 = vcmp.lt.s32.totalorder %v1893_v62, 15 }
 0x19e   :  { %v2523_v9 = vadd.f32 %v915_v14, %v2429_v55  ;;  %v2526_v6 = vadd.f32 %v916_v48, %v2432_v10  ;;  %v1332_v55 = vmul.f32 %v1331_v54, %v1814_v23  ;;  %v1334_v10 = vmul.f32 %v2180_v41, %v1333_v16 }
 0x1a0   :  { %v1289_v19 = vld.sshfl [vmem:[#allocation1 + $0x8] sm:$0xff pattern:$0x73625140]  ;;  %v1288_v20 = vld.sshfl [vmem:[#allocation1] sm:$0xff pattern:$0x73625140]  ;;  %v1335_v11 = vadd.f32 %v1334_v10, %v1332_v55 }
 0x1a1   :  { %1294 = vrot.lane.b32.xlu0 %v1289_v19, %s1779_s17  ;;  %1313 = vst [vmem:[#allocation1] ss:$4 sm:$0xff] %v1311_v56  ;;  %1292 = vrot.lane.b32.xlu2 %v1288_v20, %s1779_s17 }
 0x1a3   :  { %v933_v1 = vpop.permute.xlu1 %932 }
 0x1a4   :  { %v937_v26 = vsel %vm936_vm15, %v933_v1, %v935_v21  ;;  %v938_v28 = vsel %vm936_vm15, %v935_v21, %v933_v1  ;;  %vm986_vm15 = vcmp.lt.s32.totalorder %v1862_v42, 111 }
 0x1a5   :  { %v941_v29 = vsel %vm939_vm13, %v937_v26, 0.0  ;;  %v942_v27 = vsel %vm940_vm1, %v938_v28, 0.0  ;;  %vm989_vm13 = vmand %vm148_vm6, %vm3011_vm0 }
 0x1a6   :  { %v2546_v7 = vadd.f32 %v941_v29, %v2448_v22  ;;  %v2549_v0 = vadd.f32 %v942_v27, %v2451_v24  ;;  %v1360_v22 = vmul.f32 %v2180_v41, %v1359_v15  ;;  %vm990_vm1 = vmand %vm149_vm3, %vm3012_vm4 }
 0x1a7   :  { %vm1016_vm0 = vmand %vm149_vm3, %vm2982_vm14 }
 0x1a8   :  { %v1314_v35 = vld.sshfl [vmem:[#allocation1] sm:$0xff pattern:$0x73625140]  ;;  %v1315_v36 = vld.sshfl [vmem:[#allocation1 + $0x8] sm:$0xff pattern:$0x73625140]  ;;  %v1361_v2 = vadd.f32 %v1360_v22, %v1358_v37  ;;  %vm1041_vm4 = vmand %vm148_vm6, %vm2977_vm12 }
 0x1a9   :  { %1318 = vrot.lane.b32.xlu1 %v1314_v35, %s1780_s20  ;;  %1337 = vst [vmem:[#allocation1] ss:$4 sm:$0xff] %v1335_v11  ;;  %1320 = vrot.lane.b32.xlu2 %v1315_v36, %s1780_s20 }
 0x1ab   :  { %v961_v24 = vpop.permute.xlu1 %960  ;;  %v959_v32 = vpop.permute.xlu0 %958 }
 0x1ac   :  { %v963_v43 = vsel %vm962_vm10, %v959_v32, %v961_v24  ;;  %v964_v44 = vsel %vm962_vm10, %v961_v24, %v959_v32  ;;  %vm1012_vm10 = vcmp.lt.s32.totalorder %v1862_v42, 110 }
 0x1ad   :  { %v965_v45 = vsel %vm148_vm6, %v963_v43, 0.0  ;;  %v966_v25 = vsel %vm149_vm3, %v964_v44, 0.0 }
 0x1ae   :  { %v2563_v46 = vadd.f32 %v965_v45, %v2468_v38  ;;  %v2566_v51 = vadd.f32 %v966_v25, %v2471_v39  ;;  %v1384_v38 = vmul.f32 %v1383_v17, %v1814_v23  ;;  %v1386_v39 = vmul.f32 %v2180_v41, %v1385_v53  ;;  %v1011_v41 = vpop.permute.xlu2 %1010 }
 0x1b0   :  { %v1339_v52 = vld.sshfl [vmem:[#allocation1 + $0x8] sm:$0xff pattern:$0x73625140]  ;;  %v1338_v60 = vld.sshfl [vmem:[#allocation1] sm:$0xff pattern:$0x73625140]  ;;  %v1387_v50 = vadd.f32 %v1386_v39, %v1384_v38 }
 0x1b1   :  { %1344 = vrot.lane.b32.xlu1 %v1339_v52, %s1781_s21  ;;  %1342 = vrot.lane.b32.xlu0 %v1338_v60, %s1781_s21  ;;  %1363 = vst [vmem:[#allocation1] ss:$4 sm:$0xff] %v1361_v2 }
 0x1b3   :  { %v985_v61 = vpop.permute.xlu0 %984 }
 0x1b4   :  { %v987_v40 = vsel %vm986_vm15, %v983_v18, %v985_v61  ;;  %v988_v31 = vsel %vm986_vm15, %v985_v61, %v983_v18  ;;  %vm1015_vm15 = vmand %vm148_vm6, %vm162_vm11  ;;  %vm2981_vm6 = vcmp.lt.s32.totalorder %v1886_v57, 14 }
 0x1b5   :  { %v991_v3 = vsel %vm989_vm13, %v987_v40, 0.0  ;;  %v992_v4 = vsel %vm990_vm1, %v988_v31, 0.0  ;;  %vm1038_vm13 = vcmp.lt.s32.totalorder %v1862_v42, 109  ;;  %vm1042_vm1 = vmand %vm149_vm3, %vm2976_vm2  ;;  %vm3017_vm2 = vcmp.ge.s32.totalorder %v1890_v59, 1 }
 0x1b6   :  { %v2582_v34 = vadd.f32 %v991_v3, %v2501_v47  ;;  %v2585_v49 = vadd.f32 %v992_v4, %v2503_v63  ;;  %vm1067_vm3 = vmand %vm2981_vm6, %vm154_vm5  ;;  %v1061_v10 = vpop.permute.xlu2 %1060 }
 0x1b7   :  { %vm2674_vm12 = vmand %vm2981_vm6, %vm3017_vm2  ;;  %vm152_vm2 = vcmp.lt.s32.totalorder %v1886_v57, 13 }
 0x1b8   :  { %v1365_v23 = vld.sshfl [vmem:[#allocation1 + $0x8] sm:$0xff pattern:$0x73625140]  ;;  %v1364_v33 = vld.sshfl [vmem:[#allocation1] sm:$0xff pattern:$0x73625140] }
 0x1b9   :  { %1370 = vrot.lane.b32.xlu0 %v1365_v23, %s1782_s22  ;;  %1389 = vst [vmem:[#allocation1] ss:$4 sm:$0xff] %v1387_v50  ;;  %1368 = vrot.lane.b32.xlu2 %v1364_v33, %s1782_s22 }
 0x1bb   :  { %v1009_v47 = vpop.permute.xlu1 %1008 }
 0x1bc   :  { %v1013_v63 = vsel %vm1012_vm10, %v1009_v47, %v1011_v41  ;;  %v1014_v8 = vsel %vm1012_vm10, %v1011_v41, %v1009_v47  ;;  %vm2980_vm10 = vcmp.lt.s32.totalorder %v1888_v58, 14 }
 0x1bd   :  { %v1017_v5 = vsel %vm1015_vm15, %v1013_v63, 0.0  ;;  %v1018_v12 = vsel %vm1016_vm0, %v1014_v8, 0.0  ;;  %vm1064_vm15 = vcmp.lt.s32.totalorder %v1862_v42, 99  ;;  %vm1068_vm0 = vmand %vm2980_vm10, %vm155_vm7 }
 0x1be   :  { %v2597_v13 = vadd.f32 %v1017_v5, %v2523_v9  ;;  %v2600_v14 = vadd.f32 %v1018_v12, %v2526_v6  ;;  %v1089_v30 = vpop.permute.xlu2 %1088 }
 0x1c0   :  { %v1390_v48 = vld.sshfl [vmem:[#allocation1] sm:$0xff pattern:$0x73625140]  ;;  %v1391_v56 = vld.sshfl [vmem:[#allocation1 + $0x8] sm:$0xff pattern:$0x73625140] }
 0x1c1   :  { %1394 = vrot.lane.b32.xlu1 %v1390_v48, %s1783_s23  ;;  %1396 = vrot.lane.b32.xlu2 %v1391_v56, %s1783_s23 }
 0x1c3   :  { %v1037_v9 = vpop.permute.xlu1 %1036  ;;  %v1035_v6 = vpop.permute.xlu0 %1034 }
 0x1c4   :  { %v1039_v54 = vsel %vm1038_vm13, %v1035_v6, %v1037_v9  ;;  %v1040_v16 = vsel %vm1038_vm13, %v1037_v9, %v1035_v6  ;;  %vm1090_vm13 = vcmp.lt.s32.totalorder %v1862_v42, 98 }
 0x1c5   :  { %v1043_v19 = vsel %vm1041_vm4, %v1039_v54, 0.0  ;;  %v1044_v20 = vsel %vm1042_vm1, %v1040_v16, 0.0  ;;  %vm2653_vm4 = vmand %vm2981_vm6, %vm2979_vm8  ;;  %vm153_vm8 = vcmp.lt.s32.totalorder %v1888_v58, 13 }
 0x1c6   :  { %v2612_v21 = vadd.f32 %v1043_v19, %v2546_v7  ;;  %v2615_v55 = vadd.f32 %v1044_v20, %v2549_v0  ;;  %vm2661_vm1 = vmand %vm2980_vm10, %vm2978_vm9  ;;  %vm3023_vm9 = vcmp.lt.s32.totalorder %v1893_v62, 15 }
 0x1cb   :  { %v1063_v1 = vpop.permute.xlu0 %1062  ;;  %v1139_v36 = vpop.permute.xlu2 %1138 }
 0x1cc   :  { %v1065_v26 = vsel %vm1064_vm15, %v1061_v10, %v1063_v1  ;;  %v1066_v28 = vsel %vm1064_vm15, %v1063_v1, %v1061_v10  ;;  %vm1116_vm15 = vcmp.lt.s32.totalorder %v1862_v42, 97 }
 0x1cd   :  { %v1069_v29 = vsel %vm1067_vm3, %v1065_v26, 0.0  ;;  %v1070_v27 = vsel %vm1068_vm0, %v1066_v28, 0.0  ;;  %vm1142_vm3 = vcmp.lt.s32.totalorder %v1862_v42, 96  ;;  %vm1166_vm0 = vcmp.lt.s32.totalorder %v1862_v42, 95 }
 0x1ce   :  { %v2629_v11 = vadd.f32 %v1069_v29, %v2563_v46  ;;  %v2632_v7 = vadd.f32 %v1070_v27, %v2566_v51 }
 0x1d3   :  { %v1087_v0 = vpop.permute.xlu1 %1086  ;;  %v1165_v24 = vpop.permute.xlu2 %1164 }
 0x1d4   :  { %v1091_v60 = vsel %vm1090_vm13, %v1087_v0, %v1089_v30  ;;  %v1092_v39 = vsel %vm1090_vm13, %v1089_v30, %v1087_v0  ;;  %vm3020_vm13 = vcmp.lt.s32.totalorder %v1890_v59, 15 }
 0x1d5   :  { %v1095_v61 = vsel %vm2653_vm4, %v1091_v60, 0.0  ;;  %v1096_v3 = vsel %vm2661_vm1, %v1092_v39, 0.0  ;;  %vm2688_vm4 = vmand %vm2981_vm6, %vm3020_vm13  ;;  %vm3026_vm13 = vcmp.ge.s32.totalorder %v1893_v62, 1 }
 0x1d6   :  { %vm2697_vm1 = vmand %vm2980_vm10, %vm3023_vm9  ;;  %v2703_v8 = vadd.f32 %v1095_v61, %v2582_v34  ;;  %vm1192_vm9 = vcmp.lt.s32.totalorder %v1862_v42, 94  ;;  %v2720_v48 = vadd.f32 %v1096_v3, %v2585_v49 }
 0x1db   :  { %v1113_v15 = vpop.permute.xlu0 %1112  ;;  %v1115_v35 = vpop.permute.xlu1 %1114 }
 0x1dc   :  { %v1117_v4 = vsel %vm1116_vm15, %v1113_v15, %v1115_v35  ;;  %v2715_v12 = vsel %vm1116_vm15, %v1115_v35, %v1113_v15  ;;  %vm1270_vm15 = vcmp.lt.s32.totalorder %v1862_v42, 82 }
 0x1dd   :  { %v1121_v34 = vsel %vm2674_vm12, %v1117_v4, 0.0  ;;  %vm2753_vm12 = vmand %vm2980_vm10, %vm2982_vm14  ;;  %vm3043_vm14 = vcmp.lt.s32.totalorder %v1890_v59, 15 }
 0x1de   :  { %v2783_v0 = vadd.f32 %v1121_v34, %v2597_v13 }
 0x1e3   :  { %v1141_v37 = vpop.permute.xlu0 %1140  ;;  %v2638_v44 = vpop.permute.xlu2 %1214 }
 0x1e4   :  { %v1143_v50 = vsel %vm1142_vm3, %v1139_v36, %v1141_v37  ;;  %v1144_v33 = vsel %vm1142_vm3, %v1141_v37, %v1139_v36  ;;  %vm2709_vm3 = vmand %vm2980_vm10, %vm3026_vm13 }
 0x1e5   :  { %v1145_v56 = vsel %vm2981_vm6, %v1143_v50, 0.0  ;;  %vm2730_vm13 = vmand %vm152_vm2, %vm154_vm5  ;;  %v1146_v49 = vsel %vm2980_vm10, %v1144_v33, 0.0  ;;  %v1122_v1 = vsel %vm2709_vm3, %v2715_v12, 0.0  ;;  %vm3037_vm10 = vcmp.ge.s32.totalorder %v1890_v59, 2 }
 0x1e6   :  { %vm2745_vm5 = vmand %vm2981_vm6, %vm162_vm11  ;;  %v1147_v30 = vadd.f32 %v1145_v56, %v2612_v21  ;;  %vm3040_vm3 = vcmp.ge.s32.totalorder %v1893_v62, 2  ;;  %v1148_v37 = vadd.f32 %v1146_v49, %v2615_v55  ;;  %v1124_v20 = vadd.f32 %v1122_v1, %v2600_v14 }
 0x1e7   :  { %vm2777_vm6 = vmand %vm152_vm2, %vm3037_vm10 }
 0x1eb   :  { %v1163_v22 = vpop.permute.xlu1 %1162  ;;  %v1243_v2 = vpop.permute.xlu2 %1242 }
 0x1ec   :  { %v1167_v47 = vsel %vm1166_vm0, %v1163_v22, %v1165_v24  ;;  %v1168_v63 = vsel %vm1166_vm0, %v1165_v24, %v1163_v22  ;;  %vm1244_vm0 = vcmp.lt.s32.totalorder %v1862_v42, 83 }
 0x1ed   :  { %v1171_v54 = vsel %vm2688_vm4, %v1167_v47, 0.0  ;;  %v1172_v16 = vsel %vm2697_vm1, %v1168_v63, 0.0  ;;  %vm1218_vm4 = vcmp.lt.s32.totalorder %v1862_v42, 93  ;;  %vm2762_vm1 = vmand %vm153_vm8, %vm155_vm7  ;;  %vm1346_vm7 = vcmp.lt.s32.totalorder %v1862_v42, 79 }
 0x1ee   :  { %v1173_v13 = vadd.f32 %v1171_v54, %v2629_v11  ;;  %v1174_v21 = vadd.f32 %v1172_v16, %v2632_v7 }
 0x1f3   :  { %v2634_v32 = vpop.permute.xlu0 %1188  ;;  %v2636_v43 = vpop.permute.xlu1 %1190 }
 0x1f4   :  { %v1194_v38 = vsel %vm1192_vm9, %v2636_v43, %v2634_v32 }
 0x1fb   :  { %v2640_v45 = vpop.permute.xlu0 %1216  ;;  %v2642_v17 = vpop.permute.xlu2 %1292 }
 0x1fc   :  { %v1219_v39 = vsel %vm1218_vm4, %v2638_v44, %v2640_v45  ;;  %v1220_v61 = vsel %vm1218_vm4, %v2640_v45, %v2638_v44  ;;  %vm3058_vm4 = vcmp.lt.s32.totalorder %v1893_v62, 13 }
 0x203   :  { %v1241_v25 = vpop.permute.xlu1 %1240  ;;  %v2678_v31 = vpop.permute.xlu2 %1320 }
 0x204   :  { %v1245_v26 = vsel %vm1244_vm0, %v1241_v25, %v1243_v2  ;;  %v1246_v28 = vsel %vm1244_vm0, %v1243_v2, %v1241_v25  ;;  %vm2790_vm0 = vmand %vm153_vm8, %vm3040_vm3 }
 0x205   :  { %vm2806_vm3 = vmand %vm152_vm2, %vm3043_vm14  ;;  %v1249_v25 = vsel %vm2730_vm13, %v1245_v26, 0.0  ;;  %v1250_v55 = vsel %vm2762_vm1, %v1246_v28, 0.0  ;;  %vm1372_vm14 = vcmp.lt.s32.totalorder %v1862_v42, 78 }
 0x206   :  { %vm2839_vm13 = vmand %vm152_vm2, %vm162_vm11  ;;  %vm1322_vm11 = vcmp.lt.s32.totalorder %v1862_v42, 80  ;;  %v1252_v44 = vadd.f32 %v1250_v55, %v1148_v37 }
 0x20b   :  { %v1267_v46 = vpop.permute.xlu0 %1266  ;;  %v1269_v51 = vpop.permute.xlu1 %1268 }
 0x20c   :  { %v1271_v35 = vsel %vm1270_vm15, %v1267_v46, %v1269_v51  ;;  %v1272_v36 = vsel %vm1270_vm15, %v1269_v51, %v1267_v46  ;;  %vm3046_vm15 = vcmp.lt.s32.totalorder %v1893_v62, 15  ;;  %v1193_v46 = vsel %vm1192_vm9, %v2634_v32, %v2636_v43 }
 0x20d   :  { %vm2818_vm10 = vmand %vm153_vm8, %vm3046_vm15  ;;  %v1275_v51 = vsel %vm2777_vm6, %v1271_v35, 0.0  ;;  %v1276_v52 = vsel %vm2790_vm0, %v1272_v36, 0.0  ;;  %vm3051_vm6 = vcmp.lt.s32.totalorder %v1893_v62, 14  ;;  %vm3054_vm9 = vcmp.lt.s32.totalorder %v1890_v59, 13 }
 0x20e   :  { %vm2860_vm1 = vmand %vm153_vm8, %vm3051_vm6  ;;  %v1251_v43 = vadd.f32 %v1249_v25, %v1147_v30  ;;  %vm3059_vm15 = vcmp.lt.s32.totalorder %v1888_v58, 14  ;;  %v1277_v23 = vadd.f32 %v1275_v51, %v1173_v13  ;;  %v1278_v33 = vadd.f32 %v1276_v52, %v1174_v21 }
 0x20f   :  { %vm2880_vm6 = vmand %vm3059_vm15, %vm3058_vm4 }
 0x210   :  { %v1224_v26 = vsel %vm2880_vm6, %v1220_v61, 0.0 }
 0x213   :  { %v2645_v53 = vpop.permute.xlu0 %1294  ;;  %v1369_v24 = vpop.permute.xlu2 %1368 }
 0x21b   :  { %v2647_v18 = vpop.permute.xlu1 %1318  ;;  %v1397_v35 = vpop.permute.xlu2 %1396 }
 0x21c   :  { %v1323_v28 = vsel %vm1322_vm11, %v2647_v18, %v2678_v31  ;;  %v1324_v19 = vsel %vm1322_vm11, %v2678_v31, %v2647_v18  ;;  %vm3073_vm11 = vcmp.lt.s32.totalorder %v1893_v62, 13 }
 0x21d   :  { %v1326_v1 = vsel %vm153_vm8, %v1324_v19, 0.0 }
 0x223   :  { %v1343_v6 = vpop.permute.xlu0 %1342  ;;  %v1345_v27 = vpop.permute.xlu1 %1344 }
 0x224   :  { %v1347_v7 = vsel %vm1346_vm7, %v1343_v6, %v1345_v27  ;;  %v1348_v2 = vsel %vm1346_vm7, %v1345_v27, %v1343_v6  ;;  %vm3055_vm7 = vcmp.lt.s32.totalorder %v1886_v57, 14 }
 0x225   :  { %vm2868_vm0 = vmand %vm3055_vm7, %vm3054_vm9  ;;  %v1351_v45 = vsel %vm2806_vm3, %v1347_v7, 0.0  ;;  %v1352_v3 = vsel %vm2818_vm10, %v1348_v2, 0.0  ;;  %vm3062_vm3 = vcmp.ge.s32.totalorder %v1890_v59, 1  ;;  %vm3065_vm9 = vcmp.lt.s32.totalorder %v1862_v42, 81 }
 0x226   :  { %vm2892_vm10 = vmand %vm152_vm2, %vm3062_vm3  ;;  %v1297_v5 = vsel %vm3065_vm9, %v2642_v17, %v2645_v53  ;;  %v1353_v6 = vadd.f32 %v1351_v45, %v1251_v43  ;;  %v1354_v49 = vadd.f32 %v1352_v3, %v1252_v44  ;;  %v1223_v10 = vsel %vm2868_vm0, %v1219_v39, 0.0 }
 0x227   :  { %vm3066_vm7 = vmmov %vm3065_vm9  ;;  %v1301_v30 = vsel %vm2892_vm10, %v1297_v5, 0.0  ;;  %v1225_v31 = vadd.f32 %v1223_v10, %v2783_v0  ;;  %vm1454_vm9 = vcmask 1041408  }
 0x228   :  { %v1298_v12 = vsel %vm3066_vm7, %v2645_v53, %v2642_v17  ;;  %v1197_v17 = vsel %vm2745_vm5, %v1193_v46, 0.0  ;;  %v1198_v53 = vsel %vm2753_vm12, %v1194_v38, 0.0  ;;  %vm1398_vm5 = vcmp.lt.s32.totalorder %v1862_v42, 77 }
 0x229   :  { %vm3070_vm12 = vcmp.lt.s32.totalorder %v1890_v59, 13  ;;  %v1199_v18 = vadd.f32 %v1197_v17, %v2703_v8  ;;  %v1200_v14 = vadd.f32 %v1198_v53, %v2720_v48  ;;  %v1226_v42 = vadd.f32 %v1224_v26, %v1124_v20 }
 0x22a   :  { %v1325_v59 = vsel %vm152_vm2, %v1323_v28, 0.0 }
 0x22b   :  { %v1371_v4 = vpop.permute.xlu0 %1370  ;;  %v1303_v13 = vadd.f32 %v1301_v30, %v1199_v18  ;;  %v1328_v25 = vadd.f32 %v1326_v1, %v1226_v42 }
 0x22c   :  { %v1373_v41 = vsel %vm1372_vm14, %v1369_v24, %v1371_v4  ;;  %v1374_v47 = vsel %vm1372_vm14, %v1371_v4, %v1369_v24  ;;  %vm3067_vm14 = vcmp.ge.s32.totalorder %v1893_v62, 1  ;;  %v1327_v24 = vadd.f32 %v1325_v59, %v1225_v31 }
 0x22d   :  { %v1377_v34 = vsel %vm2839_vm13, %v1373_v41, 0.0  ;;  %v1378_v56 = vsel %vm2860_vm1, %v1374_v47, 0.0  ;;  %vm2912_vm4 = vmand %vm153_vm8, %vm3067_vm14 }
 0x22e   :  { %v1379_v54 = vadd.f32 %v1377_v34, %v1277_v23  ;;  %v1380_v16 = vadd.f32 %v1378_v56, %v1278_v33  ;;  %v1302_v15 = vsel %vm2912_vm4, %v1298_v12, 0.0  ;;  %vm2942_vm13 = vmand %vm152_vm2, %vm3070_vm12 }
 0x22f   :  { %vm1402_vm1 = vmand %vm153_vm8, %vm3073_vm11  ;;  %v1304_v21 = vadd.f32 %v1302_v15, %v1200_v14 }
 0x230   :  { %v1409_v29 = vadd.f32 %v1379_v54, %v1353_v6  ;;  %v1410_v27 = vadd.f32 %v1380_v16, %v1354_v49 }
 0x233   :  { %v1395_v37 = vpop.permute.xlu1 %1394 }
 0x234   :  { %v1399_v8 = vsel %vm1398_vm5, %v1395_v37, %v1397_v35  ;;  %v1400_v22 = vsel %vm1398_vm5, %v1397_v35, %v1395_v37 }
 0x235   :  { %v1403_v62 = vsel %vm2942_vm13, %v1399_v8, 0.0  ;;  %v1404_v48 = vsel %vm1402_vm1, %v1400_v22, 0.0 }
 0x236   :  { %v1405_v55 = vadd.f32 %v1403_v62, %v1303_v13  ;;  %v1406_v0 = vadd.f32 %v1404_v48, %v1304_v21 }
 0x238   :  { %v1407_v11 = vadd.f32 %v1405_v55, %v1327_v24  ;;  %v1408_v7 = vadd.f32 %v1406_v0, %v1328_v25 }
 0x23a   :  { %v1411_v57 = vadd.f32 %v1409_v29, %v1407_v11  ;;  %v1412_v2 = vadd.f32 %v1410_v27, %v1408_v7 }
 0x23c   :  { %v1574_v46 = vmul.f32 -1.442695, %v1411_v57  ;;  %v1575_v58 = vmul.f32 -1.442695, %v1412_v2 }
 0x23e   :  { %1630 = vpow2.f32 %v1574_v46 }
 0x23f   :  { %1632 = vpow2.f32 %v1575_v58 }
 0x244   :  { %v1631_v51 = vpop.eup %1630 }
 0x245   :  { %v1633_v52 = vpop.eup %1632  ;;  %v1419_v60 = vadd.f32 1.0, %v1631_v51 }
 0x246   :  { %v1420_v38 = vadd.f32 1.0, %v1633_v52 }
 0x247   :  { %1634 = vrcp.f32 %v1419_v60  ;;  %vm1426_vm0 = vweird.f32 %v1419_v60  ;;  %v1432_v33 = vand.u32 2147483648, %v1419_v60  ;;  %v1430_v47 = vand.u32 2147483647, %v1419_v60 }
 0x248   :  { %1636 = vrcp.f32 %v1420_v38  ;;  %v1447_v3 = vand.u32 2147483648, %v1420_v38  ;;  %v1445_v50 = vand.u32 2147483647, %v1420_v38  ;;  %vm1441_vm6 = vweird.f32 %v1420_v38 }
 0x249   :  { %v1433_v56 = vor.u32 1.1754944e-38, %v1432_v33  ;;  %vm1431_vm7 = vcmp.eq.f32.partialorder %v1430_v47, 8.507059e+37 }
 0x24a   :  { %v1448_v5 = vor.u32 1.1754944e-38, %v1447_v3  ;;  %vm1446_vm10 = vcmp.eq.f32.partialorder %v1445_v50, 8.507059e+37 }
 0x24d   :  { %v1635_v39 = vpop.eup %1634 }
 0x24e   :  { %v1637_v61 = vpop.eup %1636  ;;  %v1422_v40 = vmul.f32 %v1635_v39, %v1419_v60  ;;  %vm1427_vm8 = vweird.f32 %v1635_v39 }
 0x24f   :  { %v1437_v32 = vmul.f32 %v1637_v61, %v1420_v38  ;;  %vm1442_vm2 = vweird.f32 %v1637_v61  ;;  %vm2959_vm15 = vmor %vm1426_vm0, %vm1427_vm8 }
 0x250   :  { %v1423_v43 = vsub.f32 1.0, %v1422_v40  ;;  %vm1443_vm3 = vmor %vm1441_vm6, %vm1442_vm2 }
 0x251   :  { %v1438_v44 = vsub.f32 1.0, %v1437_v32 }
 0x252   :  { %v1424_v45 = vmul.f32 %v1635_v39, %v1423_v43 }
 0x253   :  { %v1439_v4 = vmul.f32 %v1637_v61, %v1438_v44 }
 0x254   :  { %v1425_v23 = vadd.f32 %v1635_v39, %v1424_v45 }
 0x255   :  { %v1440_v63 = vadd.f32 %v1637_v61, %v1439_v4 }
 0x256   :  { %v1429_v12 = vsel %vm2959_vm15, %v1635_v39, %v1425_v23 }
 0x257   :  { %v1444_v34 = vsel %vm1443_vm3, %v1637_v61, %v1440_v63  ;;  %v1434_v49 = vsel %vm1431_vm7, %v1433_v56, %v1429_v12 }
 0x258   :  { %v1449_v9 = vsel %vm1446_vm10, %v1448_v5, %v1444_v34 }
 0x259   :  { %v1453_v6 = vrot.slane %v1449_v9, 6 }
 0x25b   :  { %v1455_v54 = vsel %vm1454_vm9, %v1434_v49, %v1453_v6 }
 0x25c   :  { %1457 = vst [vmem:[#allocation11] sm:$0xf] %v1455_v54 }
 0x25d   :  { %1468 = dma.vmem_to_hbm [thread:$0]  %s1464_s25, 64, %s1466_s1, [#allocation6]  }
 0x25e   :  { %1729 = dma.done.wait [#allocation6], 64  }
 0x25f   :  { %1730 = vsyncadd [#allocation6], 4294967232 }
 0x260   :  { %1473 = vsyncpa [#allocation5], 1 }
 0x261   :  { %1474 = vsyncpa [#allocation10], 1 }
 0x262   :  { %1475 = vsyncpa [#allocation6], 1 }
 0x263   :  { %1476 = vsyncpa [#allocation7], 1 }

</bundles_post_ra>
